<compile_context>
chip_gen: v5e
topology: v5e:2x2
jax: 0.10.0
libtpu: 0.0.40
codegen_flags: <defaults>
</compile_context>

<pallas_src>
import functools

import jax
import jax.numpy as jnp
from jax.experimental import pallas as pl
from jax.experimental.pallas import tpu as pltpu


_VMEM_LIMIT_BYTES = 32 * 1024 * 1024  # <= default scoped VMEM on v6e/v7x; v5e ok (128 MiB phys).


# ---------------------------------------------------------------------------
# Tile-size selection: largest multiple of 128 lanes whose (C, TILE_S) block
# stays under `cap_bytes`.  Tail tiles are handled by masking, so TILE_S does
# NOT have to divide S.
# ---------------------------------------------------------------------------
def _pick_tile_s(s, c, itemsize, cap_bytes):
    s_pad = ((s + 127) // 128) * 128
    max_lanes = (cap_bytes // max(1, c * itemsize)) // 128 * 128
    max_lanes = max(128, max_lanes)
    return min(s_pad, max_lanes)


# ---------------------------------------------------------------------------
# Fused single-pass kernel: grid (N,).  Whole (1, C, S) slab per step.
#   pool -> fc1 -> relu -> fc2 -> sigmoid -> scale, all in VMEM.
# ---------------------------------------------------------------------------
def _fused_kernel(x_ref, w1t_ref, w2t_ref, o_ref, *, inv_s):
    pooled = jnp.sum(x_ref[...].astype(jnp.float32), axis=-1) * inv_s      # (1, C)
    h = jnp.maximum(
        jnp.dot(pooled, w1t_ref[...], preferred_element_type=jnp.float32), 0.0)
    g = jnp.dot(h, w2t_ref[...], preferred_element_type=jnp.float32)       # (1, C)
    y = 1.0 / (1.0 + jnp.exp(-g))                                          # sigmoid
    o_ref[...] = x_ref[...] * y.astype(o_ref.dtype)[:, :, None]


def _fused_call(x3, w1t, w2t):
    n, c, s = x3.shape
    c_red = w1t.shape[1]
    kernel = functools.partial(_fused_kernel, inv_s=float(1.0 / s))
    return pl.pallas_call(
        kernel,
        out_shape=jax.ShapeDtypeStruct((n, c, s), x3.dtype),
        grid_spec=pltpu.PrefetchScalarGridSpec(
            num_scalar_prefetch=0,
            grid=(n,),
            in_specs=[
                pl.BlockSpec((1, c, s), lambda b: (b, 0, 0)),
                pl.BlockSpec((c, c_red), lambda b: (0, 0)),
                pl.BlockSpec((c_red, c), lambda b: (0, 0)),
            ],
            out_specs=pl.BlockSpec((1, c, s), lambda b: (b, 0, 0)),
        ),
        compiler_params=pltpu.CompilerParams(
            dimension_semantics=("parallel",),
            vmem_limit_bytes=_VMEM_LIMIT_BYTES),
    )(x3, w1t, w2t)


# ---------------------------------------------------------------------------
# Kernel 1 (two-pass path): tiled global average pool over the spatial axis.
#   grid = (N, cdiv(S, TILE_S)); lane-dense (1, C, 128) f32 scratch
#   accumulator; cross-lane reduce + mean only in the finalize.
# ---------------------------------------------------------------------------
def _pool_kernel(x_ref, pooled_ref, acc_ref, *, s, tile_s, needs_mask):
    t = pl.program_id(1)

    @pl.when(t == 0)
    def _():
        acc_ref[...] = jnp.zeros_like(acc_ref)

    base = t * tile_s
    n_chunks = tile_s // 128

    def body(j, acc):
        off = pl.multiple_of(j * 128, 128)
        chunk = x_ref[0, :, pl.ds(off, 128)].astype(jnp.float32)   # (C, 128)
        if needs_mask:
            lane = base + off + jax.lax.broadcasted_iota(jnp.int32, chunk.shape, 1)
            chunk = jnp.where(lane < s, chunk, 0.0)
        return acc + chunk

    acc_ref[0] = jax.lax.fori_loop(0, n_chunks, body, acc_ref[0])

    @pl.when(t == pl.num_programs(1) - 1)
    def _():
        total = jnp.sum(acc_ref[...], axis=-1, keepdims=True)      # (1, C, 1)
        pooled_ref[...] = total * (1.0 / float(s))


def _pool_call(x3, tile_s):
    n, c, s = x3.shape
    assert tile_s % 128 == 0
    n_tiles = pl.cdiv(s, tile_s)
    needs_mask = (s % tile_s) != 0
    kernel = functools.partial(_pool_kernel, s=s, tile_s=tile_s,
                               needs_mask=needs_mask)
    return pl.pallas_call(
        kernel,
        out_shape=jax.ShapeDtypeStruct((n, c, 1), jnp.float32),
        grid_spec=pltpu.PrefetchScalarGridSpec(
            num_scalar_prefetch=0,
            grid=(n, n_tiles),
            in_specs=[pl.BlockSpec((1, c, tile_s), lambda b, t: (b, 0, t))],
            out_specs=pl.BlockSpec((1, c, 1), lambda b, t: (b, 0, 0)),
            scratch_shapes=[pltpu.VMEM((1, c, 128), jnp.float32)],
        ),
        compiler_params=pltpu.CompilerParams(
            dimension_semantics=("parallel", "arbitrary"),
            vmem_limit_bytes=_VMEM_LIMIT_BYTES),
    )(x3)


# ---------------------------------------------------------------------------
# Kernel 2 (two-pass path): tiled channel rescale in the INPUT dtype.
#   Tail tiles: out-of-range reads are padding, writes are clipped by Pallas.
# ---------------------------------------------------------------------------
def _scale_kernel(x_ref, y_ref, o_ref):
    o_ref[...] = x_ref[...] * y_ref[...]


def _scale_call(x3, y, tile_s):
    n, c, s = x3.shape
    assert tile_s % 128 == 0
    n_tiles = pl.cdiv(s, tile_s)
    return pl.pallas_call(
        _scale_kernel,
        out_shape=jax.ShapeDtypeStruct((n, c, s), x3.dtype),
        grid_spec=pltpu.PrefetchScalarGridSpec(
            num_scalar_prefetch=0,
            grid=(n, n_tiles),
            in_specs=[
                pl.BlockSpec((1, c, tile_s), lambda b, t: (b, 0, t)),
                pl.BlockSpec((1, c, 1), lambda b, t: (b, 0, 0)),
            ],
            out_specs=pl.BlockSpec((1, c, tile_s), lambda b, t: (b, 0, t)),
        ),
        compiler_params=pltpu.CompilerParams(
            dimension_semantics=("parallel", "parallel"),
            vmem_limit_bytes=_VMEM_LIMIT_BYTES),
    )(x3, y)


# ---------------------------------------------------------------------------
# SELayer3D forward.
#   x:  (N, C, D, H, W)
#   w1: (C // reduction, C)   -- fc[0].weight (PyTorch Linear layout, no bias)
#   w2: (C, C // reduction)   -- fc[2].weight
# ---------------------------------------------------------------------------
def se_layer3d_forward(x, w1, w2, *,
                       fused_slab_bytes=4 * 1024 * 1024,
                       pool_tile_bytes=8 * 1024 * 1024,
                       scale_tile_bytes=4 * 1024 * 1024):
    n, c, d, h, w = x.shape
    s = d * h * w
    x3 = x.reshape(n, c, s)                         # free reshape (contiguous)
    w1t = w1.T.astype(jnp.float32)                  # (C, C/r)
    w2t = w2.T.astype(jnp.float32)                  # (C/r, C)

    slab_bytes = c * s * x.dtype.itemsize
    if slab_bytes <= fused_slab_bytes:
        # Fused single pass: 2x HBM traffic instead of 3x.
        out3 = _fused_call(x3, w1t, w2t)
    else:
        # Two-pass tiled path.
        itemsize = x.dtype.itemsize
        pooled = _pool_call(x3, _pick_tile_s(s, c, itemsize, pool_tile_bytes))
        p = pooled[:, :, 0]                                          # (N, C) f32
        hp = jax.lax.Precision.HIGHEST
        hdn = jnp.maximum(jnp.dot(p, w1t, precision=hp), 0.0)        # (N, C/r)
        y = jax.nn.sigmoid(jnp.dot(hdn, w2t, precision=hp))          # (N, C)
        y = y.astype(x.dtype)[:, :, None]                            # (N, C, 1)
        out3 = _scale_call(x3, y, _pick_tile_s(s, c, itemsize, scale_tile_bytes))
    return out3.reshape(n, c, d, h, w)


# ---------------------------------------------------------------------------
# Pure-JAX reference (same math) for verification.
# ---------------------------------------------------------------------------
def _reference_forward(x, w1, w2):
    n, c = x.shape[:2]
    hp = jax.lax.Precision.HIGHEST
    pooled = jnp.mean(x.astype(jnp.float32).reshape(n, c, -1), axis=-1)
    hdn = jnp.maximum(jnp.dot(pooled, w1.T, precision=hp), 0.0)
    y = jax.nn.sigmoid(jnp.dot(hdn, w2.T, precision=hp))
    out = x.astype(jnp.float32) * y[:, :, None, None, None]
    return out.astype(x.dtype)


if __name__ == "__main__":
    N, C, D, H, W = 2, 32, 16, 16, 16
    reduction = 16
    c_red = max(C // reduction, 1)

    key = jax.random.PRNGKey(0)
    kx, k1, k2 = jax.random.split(key, 3)
    x = jax.random.normal(kx, (N, C, D, H, W), jnp.float32)
    w1 = jax.random.normal(k1, (c_red, C), jnp.float32) / jnp.sqrt(C)
    w2 = jax.random.normal(k2, (C, c_red), jnp.float32) / jnp.sqrt(c_red)

    ref = jax.block_until_ready(_reference_forward(x, w1, w2))
    scale = float(jnp.max(jnp.abs(ref))) + 1e-6

    # 1) Default dispatch -> fused single-pass path (slab fits VMEM).
    out_f = jax.block_until_ready(se_layer3d_forward(x, w1, w2))
    assert out_f.shape == x.shape, out_f.shape
    err_f = float(jnp.max(jnp.abs(out_f - ref)))
    assert err_f / scale < 5e-4, (err_f, scale)

    # 2) Forced two-pass tiled path, multiple spatial tiles per batch.
    out_t = jax.block_until_ready(
        se_layer3d_forward(x, w1, w2, fused_slab_bytes=0,
                           pool_tile_bytes=128 * 1024,
                           scale_tile_bytes=128 * 1024))
    err_t = float(jnp.max(jnp.abs(out_t - ref)))
    assert err_t / scale < 1e-4, (err_t, scale)

    # 3) Odd spatial size (S = 210, not a multiple of 128) -> masked tail tiles.
    x2 = jax.random.normal(kx, (N, C, 5, 6, 7), jnp.float32)
    ref2 = jax.block_until_ready(_reference_forward(x2, w1, w2))
    scale2 = float(jnp.max(jnp.abs(ref2))) + 1e-6
    out2 = jax.block_until_ready(
        se_layer3d_forward(x2, w1, w2, fused_slab_bytes=0,
                           pool_tile_bytes=16 * 1024,
                           scale_tile_bytes=16 * 1024))
    err2 = float(jnp.max(jnp.abs(out2 - ref2)))
    assert err2 / scale2 < 1e-4, (err2, scale2)

    print("KERNEL_OK")
</pallas_src>

<mosaic_0001>
module attributes {stable_mosaic.version = 11 : i64} {
  func.func @_fused_kernel(%arg0: i32, %arg1: memref<1x32x4096xf32, #tpu.memory_space<vmem>>, %arg2: memref<32x2xf32, #tpu.memory_space<vmem>>, %arg3: memref<2x32xf32, #tpu.memory_space<vmem>>, %arg4: memref<1x32x4096xf32, #tpu.memory_space<vmem>>) attributes {dimension_semantics = [#tpu.dimension_semantics<parallel>], iteration_bounds = array<i64: 2>, scalar_prefetch = 0 : i64, scratch_operands = 0 : i64, tpu.core_type = #tpu.core_type<tc>, window_params = [{transform_indices = @transform_0, window_bounds = array<i64: 1, 32, 4096>}, {pipeline_mode = #tpu.pipeline_mode<synchronous>, transform_indices = @transform_1, window_bounds = array<i64: 32, 2>}, {pipeline_mode = #tpu.pipeline_mode<synchronous>, transform_indices = @transform_2, window_bounds = array<i64: 2, 32>}, {transform_indices = @transform_3, window_bounds = array<i64: 1, 32, 4096>}]} {
    %c0 = arith.constant 0 : index
    %c0_0 = arith.constant 0 : index
    %c0_1 = arith.constant 0 : index
    %0 = vector.load %arg1[%c0, %c0_0, %c0_1] : memref<1x32x4096xf32, #tpu.memory_space<vmem>>, vector<1x32x4096xf32>
    %cst = arith.constant dense<0.000000e+00> : vector<1x32xf32>
    %1 = vector.multi_reduction <add>, %0, %cst [2] : vector<1x32x4096xf32> to vector<1x32xf32>
    %cst_2 = arith.constant 2.44140625E-4 : f32
    %2 = vector.broadcast %cst_2 : f32 to vector<1x32xf32>
    %3 = arith.mulf %1, %2 : vector<1x32xf32>
    %c0_3 = arith.constant 0 : index
    %c0_4 = arith.constant 0 : index
    %4 = vector.load %arg2[%c0_3, %c0_4] : memref<32x2xf32, #tpu.memory_space<vmem>>, vector<32x2xf32>
    %cst_5 = arith.constant dense<0.000000e+00> : vector<1x2xf32>
    %5 = tpu.matmul %3, %4, %cst_5 {dimension_numbers = #tpu.dot_dimension_numbers<[1], [0], [0], [1], [0, 0, 1, 1], [], []>} : vector<1x32xf32>, vector<32x2xf32>, vector<1x2xf32> -> vector<1x2xf32>
    %cst_6 = arith.constant 0.000000e+00 : f32
    %6 = vector.broadcast %cst_6 : f32 to vector<1x2xf32>
    %7 = arith.maximumf %5, %6 : vector<1x2xf32>
    %c0_7 = arith.constant 0 : index
    %c0_8 = arith.constant 0 : index
    %8 = vector.load %arg3[%c0_7, %c0_8] : memref<2x32xf32, #tpu.memory_space<vmem>>, vector<2x32xf32>
    %cst_9 = arith.constant dense<0.000000e+00> : vector<1x32xf32>
    %9 = tpu.matmul %7, %8, %cst_9 {dimension_numbers = #tpu.dot_dimension_numbers<[1], [0], [0], [1], [0, 0, 1, 1], [], []>} : vector<1x2xf32>, vector<2x32xf32>, vector<1x32xf32> -> vector<1x32xf32>
    %cst_10 = arith.constant 0.000000e+00 : f32
    %10 = vector.broadcast %cst_10 : f32 to vector<1x32xf32>
    %11 = arith.subf %10, %9 : vector<1x32xf32>
    %12 = math.exp %11 : vector<1x32xf32>
    %cst_11 = arith.constant 1.000000e+00 : f32
    %13 = vector.broadcast %cst_11 : f32 to vector<1x32xf32>
    %14 = arith.addf %13, %12 : vector<1x32xf32>
    %cst_12 = arith.constant 1.000000e+00 : f32
    %15 = vector.broadcast %cst_12 : f32 to vector<1x32xf32>
    %16 = arith.divf %15, %14 : vector<1x32xf32>
    %c0_13 = arith.constant 0 : index
    %c0_14 = arith.constant 0 : index
    %c0_15 = arith.constant 0 : index
    %17 = vector.load %arg1[%c0_13, %c0_14, %c0_15] : memref<1x32x4096xf32, #tpu.memory_space<vmem>>, vector<1x32x4096xf32>
    %18 = vector.shape_cast %16 : vector<1x32xf32> to vector<1x32x1xf32>
    %19 = vector.broadcast %18 : vector<1x32x1xf32> to vector<1x32x4096xf32>
    %20 = arith.mulf %17, %19 : vector<1x32x4096xf32>
    %c0_16 = arith.constant 0 : index
    %c0_17 = arith.constant 0 : index
    %c0_18 = arith.constant 0 : index
    %21 = vector.load %arg4[%c0_16, %c0_17, %c0_18] : memref<1x32x4096xf32, #tpu.memory_space<vmem>>, vector<1x32x4096xf32>
    tpu.vector_store %arg4[%c0_16, %c0_17, %c0_18], %20 {strides = array<i32>} : memref<1x32x4096xf32, #tpu.memory_space<vmem>>, vector<1x32x4096xf32>,
    return
  }
  func.func @transform_0(%arg0: i32) -> (i32, i32, i32) {
    %c0_i32 = arith.constant 0 : i32
    %c0_i32_0 = arith.constant 0 : i32
    %c0_i32_1 = arith.constant 0 : i32
    return %arg0, %c0_i32, %c0_i32_0 : i32, i32, i32
  }
  func.func @transform_1(%arg0: i32) -> (i32, i32) {
    %c0_i32 = arith.constant 0 : i32
    %c0_i32_0 = arith.constant 0 : i32
    %c0_i32_1 = arith.constant 0 : i32
    return %c0_i32, %c0_i32_0 : i32, i32
  }
  func.func @transform_2(%arg0: i32) -> (i32, i32) {
    %c0_i32 = arith.constant 0 : i32
    %c0_i32_0 = arith.constant 0 : i32
    %c0_i32_1 = arith.constant 0 : i32
    return %c0_i32, %c0_i32_0 : i32, i32
  }
  func.func @transform_3(%arg0: i32) -> (i32, i32, i32) {
    %c0_i32 = arith.constant 0 : i32
    %c0_i32_0 = arith.constant 0 : i32
    %c0_i32_1 = arith.constant 0 : i32
    return %arg0, %c0_i32, %c0_i32_0 : i32, i32, i32
  }
}

</mosaic_0001>

<bundles_post_ra>
// kernel: tpu_custom_call.1
= control target key start
LH: loop header
LB: loop body
LE: loop exit
PB: predicated region body
PF: predicated region fallthrough
CT: control target
= control target key end

     0   :  { %8 = vsyncpa [#allocation3], 0  ;;  %s2135_s0 = inlined_call_operand.hbm [shape: f32[2,32,4096], index: 0, kind: input, shape index: {}]   ;;  %s2136_s1 = inlined_call_operand.vmem [shape: f32[32,2], index: 1, kind: input, shape index: {}]   ;;  %s2137_s2 = inlined_call_operand.vmem [shape: f32[2,32], index: 2, kind: input, shape index: {}]   ;;  %s2138_s3 = inlined_call_operand.hbm [shape: f32[2,32,4096], index: 3, kind: output, shape index: {}]  }
   0x1   :  { %10 = vsyncpa [#allocation3 + $0x1], 0 }
   0x2   :  { %11 = vsyncpa [#allocation4], 0 }
   0x3   :  { %13 = vsyncpa [#allocation4 + $0x1], 0  ;;  %s1123_s12 = smov 0   ;;  %s1125_s13 = smov 0  }
   0x4   :  { %s1127_s14 = smov 0   ;;  %s1129_s15 = smov 0  }
   0x5 LB: > { %s1144_s16 = sadd.s32 4294967295, %s1097_s15   ;;  %s920_s17 = sadd.s32 4294967294, %s1097_s15   ;;  %s1097_s15 = sphi %s1129_s15, %s2391_s15   ;;  %s1093_s14 = sphi %s1127_s14, %s2390_s14   ;;  %s1089_s13 = sphi %s1125_s13, %s2389_s13   ;;  %s1085_s12 = sphi %s1123_s12, %s2388_s12  }
   0x6   : > { %s1148_s18 = sadd.s32 1, %s1097_s15   ;;  %s26_s19 = sadd.s32 1, %s1093_s14 }
   0x7   : > { %s23_s20 = ssub.s32 %s1097_s15, %s1148_s18  ;;  %p33_p0 = scmp.ne.s32.totalorder %s1093_s14, %s1089_s13 }
   0x8   : > { %p24_p1 = scmp.eq.s32.totalorder %s23_s20, 0  ;;  %p34_p2 = scmp.eq.s32.totalorder %s1097_s15, 0 }
   0x9   : > { %p39_p3 = scmp.ne.s32.totalorder %s1089_s13, %s1085_s12  ;;  %p40_p4 = scmp.eq.s32.totalorder %s1144_s16, 0 }
   0xa   : > { %s1160_s21 = scalar_select %p24_p1, %s1093_s14, %s26_s19  }
   0xb   : > { %p1162_p5 = por %p34_p2, %p33_p0  ;;  %p1166_p6 = por %p40_p4, %p39_p3 }
   0xc   : > { %p105_p7 = scmp.eq.s32.totalorder %s1144_s16, 1  ;;  %p111_p8 = scmp.eq.s32.totalorder %s920_s17, 1 }
   0xd   : > { %p951_p10 = scmp.lt.s32.totalorder %s1097_s15, 2  ;;  %s137_s26 = sand.u32 1, %s1093_s14  }
   0xe   : > { %p1173_p11 = por %p105_p7, %p33_p0  ;;  %p1177_p12 = por %p111_p8, %p39_p3 }
   0xf   : > { %s937_s27 = sshll.u32 %s1097_s15, 10  ;;  %s923_s28 = sshll.u32 %s137_s26, 10 }
  0x10   : > { %s146_s4 = scalar_lea.hbm %s2135_s0, %s937_s27  ;;  %s141_s6 = scalar_lea.vmem [#allocation2], %s923_s28 }
  0x11   : > { %s147_s5 = sshll.u32 %s146_s4, 4  ;;  %s149_s7 = sshll.u32 %s141_s6, 4  ;;  %s148_s5 = int_to_ptr.hbm [resolvable:$true] %s147_s5  ;;  %s150_s7 = int_to_ptr.vmem [resolvable:$true] %s149_s7 }
  0x12   : > { %p1188_p13 = pnand %p951_p10, %p1162_p5  ;;  %p926_p0 = scmp.ge.s32.totalorder %s1097_s15, 1 }
  0x13   : > { %p157_p1 = scmp.lt.s32.totalorder %s1097_s15, 3  ;;  %s138_s9 = scalar_lea.sflag [#allocation3], %s137_s26 }
  0x14   : > { %s1001_s10 = sshra.s32 %s148_s5, 4  ;;  %p1005_p3 = pneg %p1188_p13  ;;  %s1002_s10 = int_to_ptr.hbm [resolvable:$true] %s1001_s10 }
  0x15   : > { %s1003_s11 = scalar_lea.hbm %s1002_s10, 1024  ;;  %s1008_s20 = scalar_lea.hbm %s2135_s0, 2048 }
  0x16   : > { %p1004_p2 = scmp.ne.s32.totalorder %s1002_s10, %s1003_s11  ;;  %p1009_p5 = scmp.lt.s32.totalorder %s1002_s10, %s2135_s0 }
  0x17   : > { %p1010_p8 = scmp.lt.s32.totalorder %s1008_s20, %s1003_s11 }
  0x18   : > { %p1006_p4 = pnand %p1005_p3, %p1004_p2 }
  0x19   : > { %p1011_p10 = por %p1010_p8, %p1009_p5 }
  0x1a   : > { %p1007_p7 = pneg %p1006_p4 }
  0x1c   : > { %p1012_p9 = pnand %p1011_p10, %p1007_p7 }
  0x1e   : > { %1015 = shalt.err (!%p1012_p9)
}
  0x1f   : > { %s1099_s26 = smov 4096   ;;  %s1100_s28 = smov 256  }
  0x20   : > { %946 = dma.hbm_to_vmem [thread:$0]  (!%p1188_p13), %s148_s5, 16384, %s150_s7, %s138_s9, %s1099_s26, %s1099_s26, %s1100_s28  }
  0x21   : > { %p158_p2 = pnand %p926_p0, %p157_p1 }
  0x23   : > { %161 = sbr.rel (%p158_p2) target bundleno = 763 (0x2fb), region = 32 }
  0x28   : > { %s1209_s29 = sand.u32 1, %s1089_s13  }
  0x29   : > { %s927_s30 = sshll.u32 %s1209_s29, 10  ;;  %s164_s4 = scalar_lea.sflag [#allocation3], %s1209_s29 }
  0x2a   : > { %s1215_s6 = scalar_lea.vmem [#allocation2], %s927_s30 }
  0x2b   : > { %1076 = dma.done.wait (%p1166_p6), %s164_s4, 16384  }
  0x2c   : > { %1078 = vsyncadd (%p1166_p6), %s164_s4, 4294950912  ;;  %v1222_v0 = vld [vmem:[%s1215_s6] sm:$0xff]  ;;  %v1225_v1 = vld [vmem:[%s1215_s6 + $0x8] sm:$0xff]  ;;  %vm468_vm0 = vcmask 130112   ;;  %vm472_vm1 = vcmask 195712   ;;  %vm476_vm2 = vcmask 261312  }
  0x2d   : > { %v1228_v2 = vld [vmem:[%s1215_s6 + $0x10] sm:$0xff]  ;;  %v319_v3 = vadd.f32 %v1225_v1, %v1222_v0  ;;  %v1233_v4 = vld [vmem:[%s1215_s6 + $0x18] sm:$0xff]  ;;  %v1237_v6 = vld [vmem:[%s1215_s6 + $0x20] sm:$0xff]  ;;  %vm478_vm3 = vcmask 261120   ;;  %vm507_vm4 = vcmask 1041408   ;;  %vm503_vm5 = vcmask 15360  }
  0x2e   : > { %v1241_v8 = vld [vmem:[%s1215_s6 + $0x28] sm:$0xff]  ;;  %v1245_v10 = vld [vmem:[%s1215_s6 + $0x30] sm:$0xff]  ;;  %v1249_v12 = vld [vmem:[%s1215_s6 + $0x38] sm:$0xff]  ;;  %s1746_s22 = scalar_lea.vmem [#allocation5], %s927_s30  ;;  %s938_s27 = sshll.u32 %s1144_s16, 10 }
  0x2f   : > { %v320_v5 = vadd.f32 %v319_v3, %v1228_v2  ;;  %v255_v13 = vld [vmem:[%s1215_s6 + $0x200] sm:$0xff]  ;;  %v256_v15 = vld [vmem:[%s1215_s6 + $0x208] sm:$0xff]  ;;  %v257_v16 = vld [vmem:[%s1215_s6 + $0x210] sm:$0xff]  ;;  %s843_s30 = scalar_lea.hbm %s2138_s3, %s938_s27  ;;  %s844_s16 = sshll.u32 %s1746_s22, 4  ;;  %s845_s16 = int_to_ptr.vmem [resolvable:$true] %s844_s16 }
  0x30   : > { %v1256_v17 = vld [vmem:[%s1215_s6 + $0x40] sm:$0xff]  ;;  %v385_v18 = vadd.f32 %v256_v15, %v255_v13  ;;  %v1260_v20 = vld [vmem:[%s1215_s6 + $0x218] sm:$0xff]  ;;  %v1263_v21 = vld [vmem:[%s1215_s6 + $0x48] sm:$0xff]  ;;  %s846_s4 = sshll.u32 %s843_s30, 4  ;;  %s1051_s9 = scalar_lea.hbm %s2138_s3, 2048  ;;  %s847_s4 = int_to_ptr.hbm [resolvable:$true] %s846_s4 }
  0x31   : > { %v321_v7 = vadd.f32 %v320_v5, %v1233_v4  ;;  %2225 = vst [vmem:[#allocation8_spill] sm:$0xff] %v1260_v20  ;;  %v1267_v24 = vld [vmem:[%s1215_s6 + $0x220] sm:$0xff]  ;;  %v1270_v25 = vld [vmem:[%s1215_s6 + $0x50] sm:$0xff]  ;;  %v1275_v28 = vld [vmem:[%s1215_s6 + $0x228] sm:$0xff]  ;;  %s1045_s23 = sshra.s32 %s847_s4, 4  ;;  %s1046_s23 = int_to_ptr.hbm [resolvable:$true] %s1045_s23 }
  0x32   : > { %v386_v22 = vadd.f32 %v385_v18, %v257_v16  ;;  %2226 = vst [vmem:[#allocation9_spill] sm:$0xff] %v1267_v24  ;;  %v1278_v29 = vld [vmem:[%s1215_s6 + $0x100] sm:$0xff]  ;;  %v1281_v30 = vld [vmem:[%s1215_s6 + $0x58] sm:$0xff]  ;;  %v1285_v32 = vld [vmem:[%s1215_s6 + $0x108] sm:$0xff]  ;;  %s1047_s5 = scalar_lea.hbm %s1046_s23, 1024  ;;  %p1052_p0 = scmp.lt.s32.totalorder %s1046_s23, %s2138_s3 }
  0x33   : > { %v322_v9 = vadd.f32 %v321_v7, %v1237_v6  ;;  %2227 = vst [vmem:[#allocation10_spill] sm:$0xff] %v1275_v28  ;;  %v1288_v33 = vld [vmem:[%s1215_s6 + $0x110] sm:$0xff]  ;;  %v352_v36 = vadd.f32 %v1285_v32, %v1278_v29  ;;  %v1297_v37 = vld [vmem:[%s1215_s6 + $0x60] sm:$0xff]  ;;  %v1301_v39 = vld [vmem:[%s1215_s6 + $0x118] sm:$0xff]  ;;  %p1048_p6 = scmp.ne.s32.totalorder %s1046_s23, %s1047_s5  ;;  %p1053_p1 = scmp.lt.s32.totalorder %s1051_s9, %s1047_s5 }
  0x34   : > { %v387_v26 = vadd.f32 %v386_v22, %v1260_v20  ;;  %v1292_v35 = vld [vmem:[%s1215_s6 + $0x230] sm:$0xff]  ;;  %v1305_v41 = vld [vmem:[%s1215_s6 + $0x238] sm:$0xff]  ;;  %v1309_v43 = vld [vmem:[%s1215_s6 + $0x68] sm:$0xff] }
  0x35   : > { %v323_v11 = vadd.f32 %v322_v9, %v1241_v8  ;;  %2228 = vst [vmem:[#allocation11_spill] sm:$0xff] %v1292_v35  ;;  %v353_v42 = vadd.f32 %v352_v36, %v1288_v33  ;;  %v1313_v45 = vld [vmem:[%s1215_s6 + $0x120] sm:$0xff]  ;;  %v1321_v49 = vld [vmem:[%s1215_s6 + $0x70] sm:$0xff]  ;;  %v1325_v51 = vld [vmem:[%s1215_s6 + $0x128] sm:$0xff]  ;;  %p1049_p9 = pnand %p1048_p6, %p1173_p11  ;;  %p1054_p3 = por %p1053_p1, %p1052_p0 }
  0x36   : > { %v388_v31 = vadd.f32 %v387_v26, %v1267_v24  ;;  %2229 = vst [vmem:[#allocation12_spill] sm:$0xff] %v1305_v41  ;;  %v1317_v47 = vld [vmem:[%s1215_s6 + $0x240] sm:$0xff]  ;;  %v1328_v52 = vld [vmem:[%s1215_s6 + $0x78] sm:$0xff]  ;;  %v1332_v54 = vld [vmem:[%s1215_s6 + $0x248] sm:$0xff] }
  0x37   : > { %v324_v14 = vadd.f32 %v323_v11, %v1245_v10  ;;  %2230 = vst [vmem:[#allocation13_spill] sm:$0xff] %v1317_v47  ;;  %v354_v48 = vadd.f32 %v353_v42, %v1301_v39  ;;  %v1337_v57 = vld [vmem:[%s1215_s6 + $0x130] sm:$0xff]  ;;  %v1340_v58 = vld [vmem:[%s1215_s6 + $0x300] sm:$0xff]  ;;  %v1343_v59 = vld [vmem:[%s1215_s6 + $0x308] sm:$0xff]  ;;  %p1050_p13 = pneg %p1049_p9 }
  0x38   : > { %v389_v38 = vadd.f32 %v388_v31, %v1275_v28  ;;  %2231 = vst [vmem:[#allocation14_spill] sm:$0xff] %v1332_v54  ;;  %v1347_v61 = vld [vmem:[%s1215_s6 + $0x250] sm:$0xff]  ;;  %v418_v3 = vadd.f32 %v1343_v59, %v1340_v58  ;;  %v1356_v5 = vld [vmem:[%s1215_s6 + $0x80] sm:$0xff]  ;;  %v1360_v9 = vld [vmem:[%s1215_s6 + $0x138] sm:$0xff] }
  0x39   : > { %v325_v19 = vadd.f32 %v324_v14, %v1249_v12  ;;  %v355_v55 = vadd.f32 %v354_v48, %v1313_v45  ;;  %2232 = vst [vmem:[#allocation15_spill] sm:$0xff] %v1340_v58  ;;  %v1351_v63 = vld [vmem:[%s1215_s6 + $0x310] sm:$0xff]  ;;  %v1363_v11 = vld [vmem:[%s1215_s6 + $0x318] sm:$0xff]  ;;  %v1372_v18 = vld [vmem:[%s1215_s6 + $0x88] sm:$0xff]  ;;  %p1055_p4 = pnand %p1054_p3, %p1050_p13 }
  0x3a   : > { %v390_v44 = vadd.f32 %v389_v38, %v1292_v35  ;;  %2233 = vst [vmem:[#allocation16_spill] sm:$0xff] %v1343_v59  ;;  %v1367_v14 = vld [vmem:[%s1215_s6 + $0x258] sm:$0xff]  ;;  %v419_v16 = vadd.f32 %v418_v3, %v1351_v63  ;;  %v1376_v22 = vld [vmem:[%s1215_s6 + $0x140] sm:$0xff]  ;;  %v1388_v36 = vld [vmem:[%s1215_s6 + $0x90] sm:$0xff] }
  0x3b   : > { %v326_v23 = vadd.f32 %v325_v19, %v1256_v17  ;;  %2234 = vst [vmem:[#allocation17_spill] sm:$0xff] %v1347_v61  ;;  %v356_v62 = vadd.f32 %v355_v55, %v1325_v51  ;;  %v1395_v42 = vld [vmem:[%s1215_s6 + $0x328] sm:$0xff]  ;;  %v1415_v3 = vld [vmem:[%s1215_s6 + $0x270] sm:$0xff]  ;;  %v1484_v28 = vld [vmem:[%s1215_s6 + $0xc0] sm:$0xff] }
  0x3c   : > { %v391_v50 = vadd.f32 %v390_v44, %v1305_v41  ;;  %2235 = vst [vmem:[#allocation18_spill] sm:$0xff] %v1351_v63  ;;  %v1475_v41 = vld [vmem:[%s1215_s6 + $0x350] sm:$0xff]  ;;  %v1491_v24 = vld [vmem:[%s1215_s6 + $0x358] sm:$0xff]  ;;  %v1571_v58 = vld [vmem:[%s1215_s6 + $0x380] sm:$0xff] }
  0x3d   : > { %v327_v27 = vadd.f32 %v326_v23, %v1263_v21  ;;  %2236 = vst [vmem:[#allocation19_spill] sm:$0xff] %v1363_v11  ;;  %v357_v15 = vadd.f32 %v356_v62, %v1337_v57  ;;  %v1379_v23 = vld [vmem:[%s1215_s6 + $0x320] sm:$0xff]  ;;  %v1479_v35 = vld [vmem:[%s1215_s6 + $0x290] sm:$0xff]  ;;  %v1495_v20 = vld [vmem:[%s1215_s6 + $0x298] sm:$0xff] }
  0x3e   : > { %v392_v56 = vadd.f32 %v391_v50, %v1317_v47  ;;  %2237 = vst [vmem:[#allocation20_spill] sm:$0xff] %v1367_v14  ;;  %v1468_v47 = vld [vmem:[%s1215_s6 + $0xb8] sm:$0xff] }
  0x3f   : > { %v328_v34 = vadd.f32 %v327_v27, %v1270_v25  ;;  %2238 = vst [vmem:[#allocation21_spill] sm:$0xff] %v1379_v23  ;;  %v1383_v27 = vld [vmem:[%s1215_s6 + $0x260] sm:$0xff]  ;;  %v358_v31 = vadd.f32 %v357_v15, %v1360_v9  ;;  %v1555_v63 = vld [vmem:[%s1215_s6 + $0x378] sm:$0xff] }
  0x40   : > { %v393_v7 = vadd.f32 %v392_v56, %v1332_v54  ;;  %2239 = vst [vmem:[#allocation22_spill] sm:$0xff] %v1383_v27  ;;  %v1408_v56 = vld [vmem:[%s1215_s6 + $0x150] sm:$0xff]  ;;  %v1420_v15 = vld [vmem:[%s1215_s6 + $0xa0] sm:$0xff]  ;;  %v1463_v54 = vld [vmem:[%s1215_s6 + $0x288] sm:$0xff] }
  0x41   : > { %v329_v40 = vadd.f32 %v328_v34, %v1281_v30  ;;  %v420_v34 = vadd.f32 %v419_v16, %v1363_v11  ;;  %2240 = vst [vmem:[#allocation23_spill] sm:$0xff] %v1395_v42  ;;  %v359_v48 = vadd.f32 %v358_v31, %v1376_v22  ;;  %v1543_v11 = vld [vmem:[%s1215_s6 + $0x2b0] sm:$0xff]  ;;  %v1559_v59 = vld [vmem:[%s1215_s6 + $0x2b8] sm:$0xff] }
  0x42   : > { %v394_v19 = vadd.f32 %v393_v7, %v1347_v61  ;;  %2243 = vst [vmem:[#allocation26_spill] sm:$0xff] %v1415_v3  ;;  %v1459_v61 = vld [vmem:[%s1215_s6 + $0x348] sm:$0xff] }
  0x43   : > { %v330_v46 = vadd.f32 %v329_v40, %v1297_v37  ;;  %v1392_v40 = vld [vmem:[%s1215_s6 + $0x148] sm:$0xff]  ;;  %v421_v50 = vadd.f32 %v420_v34, %v1379_v23  ;;  %v1431_v34 = vld [vmem:[%s1215_s6 + $0x278] sm:$0xff]  ;;  %2250 = vst [vmem:[#allocation33_spill] sm:$0xff] %v1459_v61  ;;  %v1539_v23 = vld [vmem:[%s1215_s6 + $0x370] sm:$0xff] }
  0x44   : > { %v395_v38 = vadd.f32 %v394_v19, %v1367_v14  ;;  %v360_v7 = vadd.f32 %v359_v48, %v1392_v40  ;;  %v1424_v19 = vld [vmem:[%s1215_s6 + $0x158] sm:$0xff]  ;;  %2245 = vst [vmem:[#allocation28_spill] sm:$0xff] %v1431_v34  ;;  %v1436_v48 = vld [vmem:[%s1215_s6 + $0xa8] sm:$0xff]  ;;  %v1452_v14 = vld [vmem:[%s1215_s6 + $0xb0] sm:$0xff] }
  0x45   : > { %v331_v53 = vadd.f32 %v330_v46, %v1309_v43  ;;  %v1399_v46 = vld [vmem:[%s1215_s6 + $0x268] sm:$0xff]  ;;  %2251 = vst [vmem:[#allocation34_spill] sm:$0xff] %v1463_v54 }
  0x46   : > { %2241 = vst [vmem:[#allocation24_spill] sm:$0xff] %v1399_v46  ;;  %v396_v55 = vadd.f32 %v395_v38, %v1383_v27  ;;  %v361_v38 = vadd.f32 %v360_v7, %v1408_v56  ;;  %v1447_v27 = vld [vmem:[%s1215_s6 + $0x280] sm:$0xff] }
  0x47   : > { %v332_v60 = vadd.f32 %v331_v53, %v1321_v49  ;;  %v1404_v53 = vld [vmem:[%s1215_s6 + $0x98] sm:$0xff]  ;;  %2248 = vst [vmem:[#allocation31_spill] sm:$0xff] %v1447_v27 }
  0x48   : > { %v397_v16 = vadd.f32 %v396_v55, %v1399_v46  ;;  %v1440_v55 = vld [vmem:[%s1215_s6 + $0x160] sm:$0xff]  ;;  %v362_v7 = vadd.f32 %v361_v38, %v1424_v19  ;;  %2253 = vst [vmem:[#allocation36_spill] sm:$0xff] %v1475_v41 }
  0x49   : > { %v333_v13 = vadd.f32 %v332_v60, %v1328_v52  ;;  %v1411_v60 = vld [vmem:[%s1215_s6 + $0x330] sm:$0xff]  ;;  %2246 = vst [vmem:[#allocation29_spill] sm:$0xff] %v1440_v55  ;;  %v1443_v46 = vld [vmem:[%s1215_s6 + $0x340] sm:$0xff] }
  0x4a   : > { %2242 = vst [vmem:[#allocation25_spill] sm:$0xff] %v1411_v60  ;;  %v363_v38 = vadd.f32 %v362_v7, %v1440_v55 }
  0x4b   : > { %v334_v26 = vadd.f32 %v333_v13, %v1356_v5  ;;  %v422_v13 = vadd.f32 %v421_v50, %v1395_v42  ;;  %v398_v50 = vadd.f32 %v397_v16, %v1415_v3  ;;  %2247 = vst [vmem:[#allocation30_spill] sm:$0xff] %v1443_v46  ;;  %v1456_v3 = vld [vmem:[%s1215_s6 + $0x168] sm:$0xff] }
  0x4c   : > { %2249 = vst [vmem:[#allocation32_spill] sm:$0xff] %v1456_v3  ;;  %v364_v7 = vadd.f32 %v363_v38, %v1456_v3  ;;  %v1527_v42 = vld [vmem:[%s1215_s6 + $0x2a8] sm:$0xff] }
  0x4d   : > { %v335_v44 = vadd.f32 %v334_v26, %v1372_v18  ;;  %v1427_v26 = vld [vmem:[%s1215_s6 + $0x338] sm:$0xff]  ;;  %v399_v16 = vadd.f32 %v398_v50, %v1431_v34  ;;  %v1472_v34 = vld [vmem:[%s1215_s6 + $0x170] sm:$0xff]  ;;  %2254 = vst [vmem:[#allocation37_spill] sm:$0xff] %v1479_v35 }
  0x4e   : > { %2244 = vst [vmem:[#allocation27_spill] sm:$0xff] %v1427_v26  ;;  %v365_v38 = vadd.f32 %v364_v7, %v1472_v34 }
  0x4f   : > { %v336_v62 = vadd.f32 %v335_v44, %v1388_v36  ;;  %v423_v44 = vadd.f32 %v422_v13, %v1411_v60  ;;  %v400_v50 = vadd.f32 %v399_v16, %v1447_v27  ;;  %2252 = vst [vmem:[#allocation35_spill] sm:$0xff] %v1472_v34  ;;  %v1488_v27 = vld [vmem:[%s1215_s6 + $0x178] sm:$0xff]  ;;  %v1523_v60 = vld [vmem:[%s1215_s6 + $0x368] sm:$0xff] }
  0x50   : > { %2255 = vst [vmem:[#allocation38_spill] sm:$0xff] %v1488_v27  ;;  %v366_v7 = vadd.f32 %v365_v38, %v1488_v27 }
  0x51   : > { %v337_v31 = vadd.f32 %v336_v62, %v1404_v53  ;;  %v424_v13 = vadd.f32 %v423_v44, %v1427_v26  ;;  %v401_v16 = vadd.f32 %v400_v50, %v1463_v54  ;;  %2256 = vst [vmem:[#allocation39_spill] sm:$0xff] %v1491_v24  ;;  %v1504_v54 = vld [vmem:[%s1215_s6 + $0x180] sm:$0xff] }
  0x52   : > { %2257 = vst [vmem:[#allocation40_spill] sm:$0xff] %v1495_v20  ;;  %v1511_v26 = vld [vmem:[%s1215_s6 + $0x2a0] sm:$0xff]  ;;  %v367_v38 = vadd.f32 %v366_v7, %v1504_v54 }
  0x53   : > { %v338_v62 = vadd.f32 %v337_v31, %v1420_v15  ;;  %v425_v44 = vadd.f32 %v424_v13, %v1443_v46  ;;  %v402_v50 = vadd.f32 %v401_v16, %v1479_v35  ;;  %2258 = vst [vmem:[#allocation41_spill] sm:$0xff] %v1504_v54  ;;  %v1507_v46 = vld [vmem:[%s1215_s6 + $0x360] sm:$0xff]  ;;  %v1520_v35 = vld [vmem:[%s1215_s6 + $0x188] sm:$0xff] }
  0x54   : > { %2259 = vst [vmem:[#allocation42_spill] sm:$0xff] %v1507_v46  ;;  %v368_v7 = vadd.f32 %v367_v38, %v1520_v35 }
  0x55   : > { %v339_v31 = vadd.f32 %v338_v62, %v1436_v48  ;;  %v426_v13 = vadd.f32 %v425_v44, %v1459_v61  ;;  %v1500_v61 = vld [vmem:[%s1215_s6 + $0xc8] sm:$0xff]  ;;  %2260 = vst [vmem:[#allocation43_spill] sm:$0xff] %v1511_v26  ;;  %v403_v16 = vadd.f32 %v402_v50, %v1495_v20  ;;  %v1536_v20 = vld [vmem:[%s1215_s6 + $0x190] sm:$0xff] }
  0x56   : > { %2261 = vst [vmem:[#allocation44_spill] sm:$0xff] %v1520_v35  ;;  %v369_v38 = vadd.f32 %v368_v7, %v1536_v20  ;;  %v1575_v35 = vld [vmem:[%s1215_s6 + $0x2c0] sm:$0xff] }
  0x57   : > { %v340_v62 = vadd.f32 %v339_v31, %v1452_v14  ;;  %v427_v44 = vadd.f32 %v426_v13, %v1475_v41  ;;  %v1516_v41 = vld [vmem:[%s1215_s6 + $0xd0] sm:$0xff]  ;;  %2262 = vst [vmem:[#allocation45_spill] sm:$0xff] %v1523_v60  ;;  %v404_v50 = vadd.f32 %v403_v16, %v1511_v26  ;;  %v1552_v26 = vld [vmem:[%s1215_s6 + $0x198] sm:$0xff] }
  0x58   : > { %2263 = vst [vmem:[#allocation46_spill] sm:$0xff] %v1527_v42  ;;  %v370_v7 = vadd.f32 %v369_v38, %v1552_v26 }
  0x59   : > { %v341_v31 = vadd.f32 %v340_v62, %v1468_v47  ;;  %v428_v13 = vadd.f32 %v427_v44, %v1491_v24  ;;  %v1532_v24 = vld [vmem:[%s1215_s6 + $0xd8] sm:$0xff]  ;;  %2264 = vst [vmem:[#allocation47_spill] sm:$0xff] %v1536_v20  ;;  %v405_v16 = vadd.f32 %v404_v50, %v1527_v42  ;;  %v1568_v42 = vld [vmem:[%s1215_s6 + $0x1a0] sm:$0xff] }
  0x5a   : > { %2265 = vst [vmem:[#allocation48_spill] sm:$0xff] %v1539_v23  ;;  %v371_v27 = vadd.f32 %v370_v7, %v1568_v42 }
  0x5b   : > { %v342_v62 = vadd.f32 %v341_v31, %v1484_v28  ;;  %v429_v44 = vadd.f32 %v428_v13, %v1507_v46  ;;  %2266 = vst [vmem:[#allocation49_spill] sm:$0xff] %v1543_v11  ;;  %v1548_v46 = vld [vmem:[%s1215_s6 + $0xe0] sm:$0xff]  ;;  %v406_v50 = vadd.f32 %v405_v16, %v1543_v11  ;;  %v1584_v16 = vld [vmem:[%s1215_s6 + $0x1a8] sm:$0xff] }
  0x5c   : > { %2267 = vst [vmem:[#allocation50_spill] sm:$0xff] %v1552_v26  ;;  %v1587_v11 = vld [vmem:[%s1215_s6 + $0x388] sm:$0xff]  ;;  %v1607_v26 = vld [vmem:[%s1215_s6 + $0x2d0] sm:$0xff]  ;;  %v372_v34 = vadd.f32 %v371_v27, %v1584_v16 }
  0x5d   : > { %v343_v31 = vadd.f32 %v342_v62, %v1500_v61  ;;  %v430_v13 = vadd.f32 %v429_v44, %v1523_v60  ;;  %2268 = vst [vmem:[#allocation51_spill] sm:$0xff] %v1555_v63  ;;  %v1564_v60 = vld [vmem:[%s1215_s6 + $0xe8] sm:$0xff]  ;;  %v407_v20 = vadd.f32 %v406_v50, %v1559_v59 }
  0x5e   : > { %2269 = vst [vmem:[#allocation52_spill] sm:$0xff] %v1559_v59  ;;  %v1600_v59 = vld [vmem:[%s1215_s6 + $0x1b0] sm:$0xff] }
  0x5f   : > { %v344_v62 = vadd.f32 %v343_v31, %v1516_v41  ;;  %v431_v44 = vadd.f32 %v430_v13, %v1539_v23  ;;  %2270 = vst [vmem:[#allocation53_spill] sm:$0xff] %v1568_v42  ;;  %v1580_v23 = vld [vmem:[%s1215_s6 + $0xf0] sm:$0xff]  ;;  %v408_v50 = vadd.f32 %v407_v20, %v1575_v35  ;;  %v1616_v20 = vld [vmem:[%s1215_s6 + $0x398] sm:$0xff] }
  0x60   : > { %2271 = vst [vmem:[#allocation54_spill] sm:$0xff] %v1571_v58  ;;  %v1620_v42 = vld [vmem:[%s1215_s6 + $0x2d8] sm:$0xff] }
  0x61   : > { %v345_v31 = vadd.f32 %v344_v62, %v1532_v24  ;;  %2272 = vst [vmem:[#allocation55_spill] sm:$0xff] %v1575_v35  ;;  %v432_v13 = vadd.f32 %v431_v44, %v1555_v63  ;;  %v1596_v44 = vld [vmem:[%s1215_s6 + $0xf8] sm:$0xff]  ;;  %v1603_v63 = vld [vmem:[%s1215_s6 + $0x390] sm:$0xff] }
  0x62   : > { %2273 = vst [vmem:[#allocation56_spill] sm:$0xff] %v1584_v16 }
  0x63   : > { %v346_v62 = vadd.f32 %v345_v31, %v1548_v46  ;;  %2274 = vst [vmem:[#allocation57_spill] sm:$0xff] %v1587_v11  ;;  %v1591_v31 = vld [vmem:[%s1215_s6 + $0x2c8] sm:$0xff]  ;;  %v433_v38 = vadd.f32 %v432_v13, %v1571_v58  ;;  %v1613_v58 = vld [vmem:[%s1215_s6 + $0x1b8] sm:$0xff] }
  0x64   : > { %2275 = vst [vmem:[#allocation58_spill] sm:$0xff] %v1591_v31  ;;  %v409_v13 = vadd.f32 %v408_v50, %v1591_v31  ;;  %v1626_v50 = vld [vmem:[%s1215_s6 + $0x1c0] sm:$0xff] }
  0x65   : > { %v347_v54 = vadd.f32 %v346_v62, %v1564_v60  ;;  %2276 = vst [vmem:[#allocation59_spill] sm:$0xff] %v1600_v59  ;;  %v434_v7 = vadd.f32 %v433_v38, %v1587_v11  ;;  %v1629_v31 = vld [vmem:[%s1215_s6 + $0x3a0] sm:$0xff] }
  0x66   : > { %2277 = vst [vmem:[#allocation60_spill] sm:$0xff] %v1603_v63  ;;  %v410_v38 = vadd.f32 %v409_v13, %v1607_v26  ;;  %v1632_v11 = vld [vmem:[%s1215_s6 + $0x2e0] sm:$0xff]  ;;  %v1641_v13 = vld [vmem:[%s1215_s6 + $0x3a8] sm:$0xff] }
  0x67   : > { %v348_v62 = vadd.f32 %v347_v54, %v1580_v23  ;;  %2278 = vst [vmem:[#allocation61_spill] sm:$0xff] %v1607_v26  ;;  %v373_v54 = vadd.f32 %v372_v34, %v1600_v59  ;;  %v435_v27 = vadd.f32 %v434_v7, %v1603_v63  ;;  %v1638_v63 = vld [vmem:[%s1215_s6 + $0x1c8] sm:$0xff] }
  0x68   : > { %2279 = vst [vmem:[#allocation62_spill] sm:$0xff] %v1613_v58  ;;  %v411_v7 = vadd.f32 %v410_v38, %v1620_v42  ;;  %v1644_v26 = vld [vmem:[%s1215_s6 + $0x2e8] sm:$0xff]  ;;  %v1656_v38 = vld [vmem:[%s1215_s6 + $0x2f0] sm:$0xff] }
  0x69   : > { %2280 = vst [vmem:[#allocation63_spill] sm:$0xff] %v1616_v20  ;;  %v349_v35 = vadd.f32 %v348_v62, %v1596_v44  ;;  %v374_v62 = vadd.f32 %v373_v54, %v1613_v58  ;;  %v436_v34 = vadd.f32 %v435_v27, %v1616_v20  ;;  %v1650_v58 = vld [vmem:[%s1215_s6 + $0x1d0] sm:$0xff] }
  0x6a   : > { %2281 = vst [vmem:[#allocation64_spill] sm:$0xff] %v1620_v42  ;;  %v412_v54 = vadd.f32 %v411_v7, %v1632_v11  ;;  %v1653_v27 = vld [vmem:[%s1215_s6 + $0x3b0] sm:$0xff]  ;;  %v1668_v7 = vld [vmem:[%s1215_s6 + $0x2f8] sm:$0xff] }
  0x6b   : > { %2282 = vst [vmem:[#allocation65_spill] sm:$0xff] %v1626_v50  ;;  %350 = vadd.xlane.f32.xlu0 %v349_v35  ;;  %v375_v35 = vadd.f32 %v374_v62, %v1626_v50  ;;  %v437_v59 = vadd.f32 %v436_v34, %v1629_v31  ;;  %v1662_v62 = vld [vmem:[%s1215_s6 + $0x1d8] sm:$0xff] }
  0x6c   : > { %2283 = vst [vmem:[#allocation66_spill] sm:$0xff] %v1629_v31  ;;  %v413_v16 = vadd.f32 %v412_v54, %v1644_v26  ;;  %v1665_v34 = vld [vmem:[%s1215_s6 + $0x3b8] sm:$0xff] }
  0x6d   : > { %2284 = vst [vmem:[#allocation67_spill] sm:$0xff] %v1632_v11  ;;  %v376_v42 = vadd.f32 %v375_v35, %v1638_v63  ;;  %v438_v20 = vadd.f32 %v437_v59, %v1641_v13  ;;  %v1674_v35 = vld [vmem:[%s1215_s6 + $0x1e0] sm:$0xff] }
  0x6e   : > { %2285 = vst [vmem:[#allocation68_spill] sm:$0xff] %v1638_v63  ;;  %v414_v50 = vadd.f32 %v413_v16, %v1656_v38  ;;  %v1677_v59 = vld [vmem:[%s1215_s6 + $0x3c0] sm:$0xff]  ;;  %v1683_v63 = vld [vmem:[%s1215_s6 + $0x1e8] sm:$0xff] }
  0x6f   : > { %2286 = vst [vmem:[#allocation69_spill] sm:$0xff] %v1641_v13  ;;  %v377_v11 = vadd.f32 %v376_v42, %v1650_v58  ;;  %v439_v31 = vadd.f32 %v438_v20, %v1653_v27  ;;  %v1686_v42 = vld [vmem:[%s1215_s6 + $0x3c8] sm:$0xff] }
  0x70   : > { %2287 = vst [vmem:[#allocation70_spill] sm:$0xff] %v1644_v26  ;;  %v415_v13 = vadd.f32 %v414_v50, %v1668_v7 }
  0x71   : > { %2288 = vst [vmem:[#allocation71_spill] sm:$0xff] %v1650_v58  ;;  %v378_v54 = vadd.f32 %v377_v11, %v1662_v62  ;;  %v440_v26 = vadd.f32 %v439_v31, %v1665_v34  ;;  %v1694_v11 = vld [vmem:[%s1215_s6 + $0x3d0] sm:$0xff] }
  0x72   : > { %2289 = vst [vmem:[#allocation72_spill] sm:$0xff] %v1653_v27  ;;  %416 = vadd.xlane.f32.xlu1 %v415_v13 }
  0x73   : > { %2290 = vst [vmem:[#allocation73_spill] sm:$0xff] %v1656_v38  ;;  %v379_v20 = vadd.f32 %v378_v54, %v1674_v35  ;;  %v441_v16 = vadd.f32 %v440_v26, %v1677_v59  ;;  %v1691_v38 = vld [vmem:[%s1215_s6 + $0x1f0] sm:$0xff]  ;;  %v1707_v26 = vld [vmem:[%s1215_s6 + $0x3e0] sm:$0xff] }
  0x74   : > { %2291 = vst [vmem:[#allocation74_spill] sm:$0xff] %v1662_v62 }
  0x75   : > { %2292 = vst [vmem:[#allocation75_spill] sm:$0xff] %v1665_v34  ;;  %v380_v31 = vadd.f32 %v379_v20, %v1683_v63  ;;  %v442_v50 = vadd.f32 %v441_v16, %v1686_v42  ;;  %v1702_v34 = vld [vmem:[%s1215_s6 + $0x3d8] sm:$0xff]  ;;  %v1716_v16 = vld [vmem:[%s1215_s6 + $0x3f0] sm:$0xff] }
  0x76   : > { %2293 = vst [vmem:[#allocation76_spill] sm:$0xff] %v1668_v7  ;;  %v1699_v7 = vld [vmem:[%s1215_s6 + $0x1f8] sm:$0xff] }
  0x77   : > { %2294 = vst [vmem:[#allocation77_spill] sm:$0xff] %v1674_v35  ;;  %v381_v27 = vadd.f32 %v380_v31, %v1691_v38  ;;  %v443_v54 = vadd.f32 %v442_v50, %v1694_v11  ;;  %v1712_v35 = vld [vmem:[%s1215_s6 + $0x3e8] sm:$0xff] }
  0x78   : > { %2295 = vst [vmem:[#allocation78_spill] sm:$0xff] %v1677_v59 }
  0x79   : > { %2296 = vst [vmem:[#allocation79_spill] sm:$0xff] %v1683_v63  ;;  %v382_v13 = vadd.f32 %v381_v27, %v1699_v7  ;;  %v444_v59 = vadd.f32 %v443_v54, %v1702_v34  ;;  %v1720_v63 = vld [vmem:[%s1215_s6 + $0x3f8] sm:$0xff]  ;;  %v456_v54 = vld [vmem:[%s2136_s1 + $0x8] sm:$0xff] }
  0x7a   : > { %2297 = vst [vmem:[#allocation80_spill] sm:$0xff] %v1686_v42  ;;  %v458_v27 = vld [vmem:[%s2136_s1 + $0x18] sm:$0xff] }
  0x7b   : > { %2298 = vst [vmem:[#allocation81_spill] sm:$0xff] %v1691_v38  ;;  %383 = vadd.xlane.f32.xlu0 %v382_v13  ;;  %v445_v20 = vadd.f32 %v444_v59, %v1707_v26  ;;  %493 = vmatpush.msra.mxu0 %v458_v27  ;;  %v457_v59 = vld [vmem:[%s2136_s1 + $0x10] sm:$0xff] }
  0x7c   : > { %2299 = vst [vmem:[#allocation82_spill] sm:$0xff] %v1694_v11 }
  0x7d   : > { %2300 = vst [vmem:[#allocation83_spill] sm:$0xff] %v1699_v7  ;;  %v446_v42 = vadd.f32 %v445_v20, %v1712_v35  ;;  %494 = vmatpush.msra.mxu0 %v457_v59  ;;  %v463_v20 = vlaneseq }
  0x7e   : > { %2301 = vst [vmem:[#allocation84_spill] sm:$0xff] %v1702_v34 }
  0x7f   : > { %2302 = vst [vmem:[#allocation85_spill] sm:$0xff] %v1707_v26  ;;  %v447_v31 = vadd.f32 %v446_v42, %v1716_v16  ;;  %495 = vmatpush.msra.mxu0 %v456_v54  ;;  %v455_v42 = vld [vmem:[%s2136_s1] sm:$0xff] }
  0x80   : > { %2303 = vst [vmem:[#allocation86_spill] sm:$0xff] %v1712_v35 }
  0x81   : > { %2304 = vst [vmem:[#allocation87_spill] sm:$0xff] %v1716_v16  ;;  %v448_v50 = vadd.f32 %v447_v31, %v1720_v63  ;;  %496 = vmatpush.msra.mxu0 %v455_v42  ;;  %v464_v31 = vand.u32 127, %v463_v20 }
  0x82   : > { %2305 = vst [vmem:[#allocation88_spill] sm:$0xff] %v1720_v63 }
  0x83   : > { %449 = vadd.xlane.f32.xlu1 %v448_v50  ;;  %v466_v27 = vadd.s32 4294967288, %v464_v31  ;;  %v470_v59 = vadd.s32 4294967280, %v464_v31  ;;  %v474_v7 = vadd.s32 4294967272, %v464_v31 }
  0xde   : > { %v351_v13 = vpop.xlane.xlu0 %350 }
  0xdf   : > { %v451_v16 = vmul.f32 0.00024414063, %v351_v13 }
  0xe1   : > { %v465_v11 = vperm.slane %v451_v16, %v464_v31 }
  0xe5   : > { %v417_v50 = vpop.xlane.xlu1 %416 }
  0xe6   : > { %v453_v34 = vmul.f32 0.00024414063, %v417_v50 }
  0xe8   : > { %v471_v38 = vperm.slane %v453_v34, %v470_v59 }
  0xee   : > { %v384_v63 = vpop.xlane.xlu0 %383 }
  0xef   : > { %v452_v35 = vmul.f32 0.00024414063, %v384_v63  ;;  %v502_v63 = vld [vmem:[%s2137_s2] sm:$0x3] }
  0xf0   : > { %930 = vmatpush.msk.msra.mxu1 %vm507_vm4, %v502_v63 }
  0xf1   : > { %v467_v26 = vperm.slane %v452_v35, %v466_v27 }
  0xf3   : > { %v469_v54 = vsel %vm468_vm0, %v467_v26, %v465_v11  ;;  %v552_v11 = vshrl.u32 %v463_v20, 7 }
  0xf4   : > { %v473_v42 = vsel %vm472_vm1, %v471_v38, %v469_v54 }
  0xf5   : > { %989 = vset.pattern.permute.xlu2 %v552_v11  ;;  %v571_v34 = vadd.s32 24, %v552_v11 }
  0xf6   : > { %v450_v62 = vpop.xlane.xlu1 %449 }
  0xf7   : > { %v454_v58 = vmul.f32 0.00024414063, %v450_v62  ;;  %v565_v62 = vadd.s32 16, %v552_v11  ;;  %992 = vset.pattern.permute.xlu1 %v571_v34 }
  0xf9   : > { %v475_v3 = vperm.slane %v454_v58, %v474_v7  ;;  %991 = vset.pattern.permute.xlu0 %v565_v62 }
  0xfb   : > { %v477_v55 = vsel %vm476_vm2, %v475_v3, %v473_v42 }
  0xfc   : > { %929 = vmatmul.msk.f32.vlgmr.msra.gmra.mxu0 %vm478_vm3, %v477_v55 }
 0x179   : > { %v498_v35 = vpop.f32.mrf.mxu0 }
 0x17a   : > { %v501_v16 = vmax.f32 %v498_v35, 0.0 }
 0x17c   : > { %931 = vmatmul.msk.f32.vlgmr.msra.gmra.mxu1 %vm503_vm5, %v501_v16  ;;  %v559_v16 = vadd.s32 8, %v552_v11 }
 0x1f9   : > { %v528_v58 = vpop.f32.mrf.mxu1 }
 0x1fa   : > { %v531_v38 = vsub.f32 0.0, %v528_v58 }
 0x1fc   : > { %v532_v3 = vmul.f32 1.442695, %v531_v38 }
 0x1fe   : > { %994 = vpow2.f32 %v532_v3 }
 0x204   : > { %v995_v55 = vpop.eup %994 }
 0x205   : > { %v534_v7 = vadd.f32 1.0, %v995_v55 }
 0x207   : > { %996 = vrcp.f32 %v534_v7  ;;  %v546_v50 = vand.u32 2147483648, %v534_v7  ;;  %v544_v59 = vand.u32 2147483647, %v534_v7  ;;  %vm540_vm7 = vweird.f32 %v534_v7 }
 0x209   : > { %v547_v54 = vor.u32 1.1754944e-38, %v546_v50  ;;  %vm545_vm9 = vcmp.eq.f32.partialorder %v544_v59, 8.507059e+37 }
 0x20d   : > { %v997_v26 = vpop.eup %996 }
 0x20e   : > { %v536_v13 = vmul.f32 %v997_v26, %v534_v7  ;;  %vm541_vm6 = vweird.f32 %v997_v26 }
 0x20f   : > { %vm542_vm8 = vmor %vm540_vm7, %vm541_vm6 }
 0x210   : > { %v537_v31 = vsub.f32 1.0, %v536_v13  ;;  %v2309_v13 = vld [vmem:[#allocation38_spill] sm:$0xff] }
 0x212   : > { %v538_v27 = vmul.f32 %v997_v26, %v537_v31  ;;  %v2310_v31 = vld [vmem:[#allocation41_spill] sm:$0xff] }
 0x214   : > { %v539_v20 = vadd.f32 %v997_v26, %v538_v27  ;;  %v2311_v27 = vld [vmem:[#allocation44_spill] sm:$0xff] }
 0x216   : > { %v543_v42 = vsel %vm542_vm8, %v997_v26, %v539_v20  ;;  %v2308_v26 = vld [vmem:[#allocation35_spill] sm:$0xff] }
 0x217   : > { %v548_v63 = vsel %vm545_vm9, %v547_v54, %v543_v42  ;;  %v2312_v20 = vld [vmem:[#allocation47_spill] sm:$0xff]  ;;  %v2313_v42 = vld [vmem:[#allocation50_spill] sm:$0xff] }
 0x218   : > { %v550_v35 = vperm.slane %v548_v63, 0 }
 0x21a   : > { %573 = vperm.xlu1 %992, %v550_v35   ;;  %567 = vperm.xlu0 %991, %v550_v35  }
 0x21b   : > { %555 = vperm.xlu2 %989, %v550_v35  }
 0x222   : > { %993 = vset.pattern.permute.xlu0 %v571_v34  ;;  %v2307_v34 = vld [vmem:[#allocation32_spill] sm:$0xff] }
 0x223   : > { %990 = vset.pattern.permute.xlu2 %v559_v16 }
 0x22b   : > { %561 = vperm.xlu2 %990, %v550_v35   ;;  %v2314_v35 = vld [vmem:[#allocation53_spill] sm:$0xff] }
 0x275   : > { %v556_v62 = vpop.permute.xlu2 %555 }
 0x276   : > { %v575_v58 = vmul.f32 %v556_v62, %v1222_v0  ;;  %v576_v38 = vmul.f32 %v556_v62, %v1225_v1  ;;  %v577_v3 = vmul.f32 %v556_v62, %v1228_v2  ;;  %v578_v55 = vmul.f32 %v556_v62, %v1233_v4 }
 0x277   : > { %v579_v7 = vmul.f32 %v556_v62, %v1237_v6  ;;  %v580_v0 = vmul.f32 %v556_v62, %v1241_v8  ;;  %v581_v1 = vmul.f32 %v556_v62, %v1245_v10  ;;  %v582_v2 = vmul.f32 %v556_v62, %v1249_v12 }
 0x278   : > { %703 = vst [vmem:[%s1746_s22] sm:$0xff] %v575_v58  ;;  %v583_v4 = vmul.f32 %v556_v62, %v1256_v17  ;;  %v584_v6 = vmul.f32 %v556_v62, %v1263_v21  ;;  %v585_v8 = vmul.f32 %v556_v62, %v1270_v25  ;;  %v586_v10 = vmul.f32 %v556_v62, %v1281_v30 }
 0x279   : > { %704 = vst [vmem:[%s1746_s22 + $0x8] sm:$0xff] %v576_v38  ;;  %v587_v12 = vmul.f32 %v556_v62, %v1297_v37  ;;  %v588_v17 = vmul.f32 %v556_v62, %v1309_v43  ;;  %v589_v21 = vmul.f32 %v556_v62, %v1321_v49  ;;  %v590_v25 = vmul.f32 %v556_v62, %v1328_v52  ;;  %v2316_v38 = vld [vmem:[#allocation59_spill] sm:$0xff] }
 0x27a   : > { %705 = vst [vmem:[%s1746_s22 + $0x10] sm:$0xff] %v577_v3  ;;  %v591_v30 = vmul.f32 %v556_v62, %v1356_v5  ;;  %v592_v37 = vmul.f32 %v556_v62, %v1372_v18  ;;  %v593_v43 = vmul.f32 %v556_v62, %v1388_v36  ;;  %v594_v49 = vmul.f32 %v556_v62, %v1404_v53 }
 0x27b   : > { %706 = vst [vmem:[%s1746_s22 + $0x18] sm:$0xff] %v578_v55  ;;  %v595_v52 = vmul.f32 %v556_v62, %v1420_v15  ;;  %v596_v5 = vmul.f32 %v556_v62, %v1436_v48  ;;  %v597_v18 = vmul.f32 %v556_v62, %v1452_v14  ;;  %v598_v11 = vmul.f32 %v556_v62, %v1468_v47  ;;  %v2317_v55 = vld [vmem:[#allocation62_spill] sm:$0xff] }
 0x27c   : > { %707 = vst [vmem:[%s1746_s22 + $0x20] sm:$0xff] %v579_v7  ;;  %v599_v36 = vmul.f32 %v556_v62, %v1484_v28  ;;  %v600_v53 = vmul.f32 %v556_v62, %v1500_v61  ;;  %v601_v15 = vmul.f32 %v556_v62, %v1516_v41  ;;  %v602_v14 = vmul.f32 %v556_v62, %v1532_v24 }
 0x27d   : > { %708 = vst [vmem:[%s1746_s22 + $0x28] sm:$0xff] %v580_v0  ;;  %v603_v47 = vmul.f32 %v556_v62, %v1548_v46  ;;  %v604_v28 = vmul.f32 %v556_v62, %v1564_v60  ;;  %v605_v61 = vmul.f32 %v556_v62, %v1580_v23  ;;  %v606_v41 = vmul.f32 %v556_v62, %v1596_v44  ;;  %v2315_v62 = vld [vmem:[#allocation56_spill] sm:$0xff]  ;;  %v2318_v0 = vld [vmem:[#allocation65_spill] sm:$0xff] }
 0x27e   : > { %709 = vst [vmem:[%s1746_s22 + $0x30] sm:$0xff] %v581_v1 }
 0x27f   : > { %710 = vst [vmem:[%s1746_s22 + $0x38] sm:$0xff] %v582_v2  ;;  %v2319_v2 = vld [vmem:[#allocation68_spill] sm:$0xff] }
 0x280   : > { %711 = vst [vmem:[%s1746_s22 + $0x40] sm:$0xff] %v583_v4 }
 0x281   : > { %712 = vst [vmem:[%s1746_s22 + $0x48] sm:$0xff] %v584_v6  ;;  %v2320_v6 = vld [vmem:[#allocation71_spill] sm:$0xff] }
 0x282   : > { %713 = vst [vmem:[%s1746_s22 + $0x50] sm:$0xff] %v585_v8 }
 0x283   : > { %714 = vst [vmem:[%s1746_s22 + $0x58] sm:$0xff] %v586_v10  ;;  %v2321_v10 = vld [vmem:[#allocation74_spill] sm:$0xff] }
 0x284   : > { %715 = vst [vmem:[%s1746_s22 + $0x60] sm:$0xff] %v587_v12 }
 0x285   : > { %716 = vst [vmem:[%s1746_s22 + $0x68] sm:$0xff] %v588_v17  ;;  %v1799_v48 = vpop.permute.xlu2 %561  ;;  %v2322_v17 = vld [vmem:[#allocation77_spill] sm:$0xff] }
 0x286   : > { %717 = vst [vmem:[%s1746_s22 + $0x70] sm:$0xff] %v589_v21  ;;  %v607_v24 = vmul.f32 %v1799_v48, %v1278_v29  ;;  %v608_v46 = vmul.f32 %v1799_v48, %v1285_v32  ;;  %v609_v23 = vmul.f32 %v1799_v48, %v1288_v33  ;;  %v610_v60 = vmul.f32 %v1799_v48, %v1301_v39 }
 0x287   : > { %718 = vst [vmem:[%s1746_s22 + $0x78] sm:$0xff] %v590_v25  ;;  %v611_v44 = vmul.f32 %v1799_v48, %v1313_v45  ;;  %v612_v29 = vmul.f32 %v1799_v48, %v1325_v51  ;;  %v613_v32 = vmul.f32 %v1799_v48, %v1337_v57  ;;  %v614_v33 = vmul.f32 %v1799_v48, %v1360_v9  ;;  %v2306_v9 = vld [vmem:[#allocation29_spill] sm:$0xff]  ;;  %v2323_v25 = vld [vmem:[#allocation79_spill] sm:$0xff] }
 0x288   : > { %719 = vst [vmem:[%s1746_s22 + $0x80] sm:$0xff] %v591_v30  ;;  %v615_v39 = vmul.f32 %v1799_v48, %v1376_v22  ;;  %v616_v45 = vmul.f32 %v1799_v48, %v1392_v40  ;;  %v617_v51 = vmul.f32 %v1799_v48, %v1408_v56  ;;  %v618_v57 = vmul.f32 %v1799_v48, %v1424_v19 }
 0x289   : > { %720 = vst [vmem:[%s1746_s22 + $0x88] sm:$0xff] %v592_v37  ;;  %v619_v22 = vmul.f32 %v1799_v48, %v2306_v9  ;;  %v620_v40 = vmul.f32 %v1799_v48, %v2307_v34  ;;  %v621_v56 = vmul.f32 %v1799_v48, %v2308_v26  ;;  %v622_v19 = vmul.f32 %v1799_v48, %v2309_v13 }
 0x28a   : > { %721 = vst [vmem:[%s1746_s22 + $0x90] sm:$0xff] %v593_v43  ;;  %v623_v50 = vmul.f32 %v1799_v48, %v2310_v31  ;;  %v624_v59 = vmul.f32 %v1799_v48, %v2311_v27  ;;  %v625_v54 = vmul.f32 %v1799_v48, %v2312_v20  ;;  %v626_v63 = vmul.f32 %v1799_v48, %v2313_v42  ;;  %v2324_v43 = vld [vmem:[#allocation81_spill] sm:$0xff] }
 0x28b   : > { %722 = vst [vmem:[%s1746_s22 + $0x98] sm:$0xff] %v594_v49  ;;  %v627_v16 = vmul.f32 %v1799_v48, %v2314_v35  ;;  %v628_v58 = vmul.f32 %v1799_v48, %v2315_v62  ;;  %v629_v3 = vmul.f32 %v1799_v48, %v2316_v38  ;;  %v630_v7 = vmul.f32 %v1799_v48, %v2317_v55 }
 0x28c   : > { %723 = vst [vmem:[%s1746_s22 + $0xa0] sm:$0xff] %v595_v52  ;;  %v631_v1 = vmul.f32 %v1799_v48, %v2318_v0  ;;  %v632_v4 = vmul.f32 %v1799_v48, %v2319_v2  ;;  %v633_v8 = vmul.f32 %v1799_v48, %v2320_v6  ;;  %v634_v12 = vmul.f32 %v1799_v48, %v2321_v10  ;;  %v1895_v37 = vpop.permute.xlu1 %573  ;;  %v2325_v52 = vld [vmem:[#allocation83_spill] sm:$0xff] }
 0x28d   : > { %724 = vst [vmem:[%s1746_s22 + $0xa8] sm:$0xff] %v596_v5  ;;  %v635_v21 = vmul.f32 %v1799_v48, %v2322_v17  ;;  %v636_v30 = vmul.f32 %v1799_v48, %v2323_v25  ;;  %v637_v49 = vmul.f32 %v1799_v48, %v2324_v43  ;;  %v638_v5 = vmul.f32 %v1799_v48, %v2325_v52  ;;  %v2330_v48 = vld [vmem:[#allocation21_spill] sm:$0xff]  ;;  %v2356_v52 = vld [vmem:[#allocation87_spill] sm:$0xff] }
 0x28e   : > { %725 = vst [vmem:[%s1746_s22 + $0xb0] sm:$0xff] %v597_v18  ;;  %v2326_v18 = vld [vmem:[#allocation15_spill] sm:$0xff] }
 0x28f   : > { %726 = vst [vmem:[%s1746_s22 + $0xb8] sm:$0xff] %v598_v11  ;;  %v671_v11 = vmul.f32 %v1895_v37, %v2326_v18  ;;  %v2357_v18 = vld [vmem:[#allocation88_spill] sm:$0xff] }
 0x290   : > { %727 = vst [vmem:[%s1746_s22 + $0xc0] sm:$0xff] %v599_v36  ;;  %v2327_v36 = vld [vmem:[#allocation16_spill] sm:$0xff] }
 0x291   : > { %728 = vst [vmem:[%s1746_s22 + $0xc8] sm:$0xff] %v600_v53  ;;  %v672_v53 = vmul.f32 %v1895_v37, %v2327_v36  ;;  %v998_v36 = vld [vmem:[%s1215_s6 + $0x200] sm:$0xff] }
 0x292   : > { %729 = vst [vmem:[%s1746_s22 + $0xd0] sm:$0xff] %v601_v15  ;;  %v2328_v15 = vld [vmem:[#allocation18_spill] sm:$0xff] }
 0x293   : > { %730 = vst [vmem:[%s1746_s22 + $0xd8] sm:$0xff] %v602_v14  ;;  %v673_v14 = vmul.f32 %v1895_v37, %v2328_v15  ;;  %v999_v15 = vld [vmem:[%s1215_s6 + $0x208] sm:$0xff] }
 0x294   : > { %731 = vst [vmem:[%s1746_s22 + $0xe0] sm:$0xff] %v603_v47  ;;  %v2329_v47 = vld [vmem:[#allocation19_spill] sm:$0xff] }
 0x295   : > { %732 = vst [vmem:[%s1746_s22 + $0xe8] sm:$0xff] %v604_v28  ;;  %v674_v28 = vmul.f32 %v1895_v37, %v2329_v47  ;;  %v1000_v47 = vld [vmem:[%s1215_s6 + $0x210] sm:$0xff]  ;;  %s832_s6 = scalar_lea.sflag [#allocation4], %s1209_s29 }
 0x296   : > { %733 = vst [vmem:[%s1746_s22 + $0xf0] sm:$0xff] %v605_v61  ;;  %v675_v61 = vmul.f32 %v1895_v37, %v2330_v48 }
 0x297   : > { %734 = vst [vmem:[%s1746_s22 + $0xf8] sm:$0xff] %v606_v41  ;;  %v2331_v41 = vld [vmem:[#allocation23_spill] sm:$0xff] }
 0x298   : > { %735 = vst [vmem:[%s1746_s22 + $0x100] sm:$0xff] %v607_v24  ;;  %v676_v24 = vmul.f32 %v1895_v37, %v2331_v41 }
 0x299   : > { %736 = vst [vmem:[%s1746_s22 + $0x108] sm:$0xff] %v608_v46  ;;  %v2332_v46 = vld [vmem:[#allocation25_spill] sm:$0xff] }
 0x29a   : > { %737 = vst [vmem:[%s1746_s22 + $0x110] sm:$0xff] %v609_v23  ;;  %v677_v23 = vmul.f32 %v1895_v37, %v2332_v46 }
 0x29b   : > { %738 = vst [vmem:[%s1746_s22 + $0x118] sm:$0xff] %v610_v60  ;;  %v2333_v60 = vld [vmem:[#allocation27_spill] sm:$0xff] }
 0x29c   : > { %739 = vst [vmem:[%s1746_s22 + $0x120] sm:$0xff] %v611_v44  ;;  %v678_v44 = vmul.f32 %v1895_v37, %v2333_v60 }
 0x29d   : > { %740 = vst [vmem:[%s1746_s22 + $0x128] sm:$0xff] %v612_v29  ;;  %v2334_v29 = vld [vmem:[#allocation30_spill] sm:$0xff] }
 0x29e   : > { %741 = vst [vmem:[%s1746_s22 + $0x130] sm:$0xff] %v613_v32  ;;  %v679_v32 = vmul.f32 %v1895_v37, %v2334_v29 }
 0x29f   : > { %742 = vst [vmem:[%s1746_s22 + $0x138] sm:$0xff] %v614_v33  ;;  %v2335_v33 = vld [vmem:[#allocation33_spill] sm:$0xff] }
 0x2a0   : > { %743 = vst [vmem:[%s1746_s22 + $0x140] sm:$0xff] %v615_v39  ;;  %v680_v39 = vmul.f32 %v1895_v37, %v2335_v33 }
 0x2a1   : > { %744 = vst [vmem:[%s1746_s22 + $0x148] sm:$0xff] %v616_v45  ;;  %v2336_v45 = vld [vmem:[#allocation36_spill] sm:$0xff] }
 0x2a2   : > { %745 = vst [vmem:[%s1746_s22 + $0x150] sm:$0xff] %v617_v51  ;;  %v681_v51 = vmul.f32 %v1895_v37, %v2336_v45 }
 0x2a3   : > { %746 = vst [vmem:[%s1746_s22 + $0x158] sm:$0xff] %v618_v57  ;;  %v2337_v57 = vld [vmem:[#allocation39_spill] sm:$0xff] }
 0x2a4   : > { %747 = vst [vmem:[%s1746_s22 + $0x160] sm:$0xff] %v619_v22  ;;  %v682_v9 = vmul.f32 %v1895_v37, %v2337_v57  ;;  %v2338_v22 = vld [vmem:[#allocation42_spill] sm:$0xff] }
 0x2a5   : > { %748 = vst [vmem:[%s1746_s22 + $0x168] sm:$0xff] %v620_v40  ;;  %v683_v34 = vmul.f32 %v1895_v37, %v2338_v22  ;;  %v2339_v40 = vld [vmem:[#allocation45_spill] sm:$0xff] }
 0x2a6   : > { %749 = vst [vmem:[%s1746_s22 + $0x170] sm:$0xff] %v621_v56  ;;  %v684_v26 = vmul.f32 %v1895_v37, %v2339_v40  ;;  %v2340_v56 = vld [vmem:[#allocation48_spill] sm:$0xff] }
 0x2a7   : > { %750 = vst [vmem:[%s1746_s22 + $0x178] sm:$0xff] %v622_v19  ;;  %v685_v13 = vmul.f32 %v1895_v37, %v2340_v56  ;;  %v2341_v19 = vld [vmem:[#allocation51_spill] sm:$0xff] }
 0x2a8   : > { %751 = vst [vmem:[%s1746_s22 + $0x180] sm:$0xff] %v623_v50  ;;  %v686_v31 = vmul.f32 %v1895_v37, %v2341_v19  ;;  %v2342_v50 = vld [vmem:[#allocation54_spill] sm:$0xff] }
 0x2a9   : > { %752 = vst [vmem:[%s1746_s22 + $0x188] sm:$0xff] %v624_v59  ;;  %v687_v27 = vmul.f32 %v1895_v37, %v2342_v50  ;;  %v2343_v59 = vld [vmem:[#allocation57_spill] sm:$0xff] }
 0x2aa   : > { %753 = vst [vmem:[%s1746_s22 + $0x190] sm:$0xff] %v625_v54  ;;  %v688_v20 = vmul.f32 %v1895_v37, %v2343_v59  ;;  %v2344_v54 = vld [vmem:[#allocation60_spill] sm:$0xff] }
 0x2ab   : > { %754 = vst [vmem:[%s1746_s22 + $0x198] sm:$0xff] %v626_v63  ;;  %v689_v42 = vmul.f32 %v1895_v37, %v2344_v54  ;;  %v2345_v63 = vld [vmem:[#allocation63_spill] sm:$0xff] }
 0x2ac   : > { %755 = vst [vmem:[%s1746_s22 + $0x1a0] sm:$0xff] %v627_v16  ;;  %v690_v35 = vmul.f32 %v1895_v37, %v2345_v63  ;;  %v2346_v16 = vld [vmem:[#allocation66_spill] sm:$0xff] }
 0x2ad   : > { %756 = vst [vmem:[%s1746_s22 + $0x1a8] sm:$0xff] %v628_v58  ;;  %v691_v62 = vmul.f32 %v1895_v37, %v2346_v16  ;;  %v2347_v58 = vld [vmem:[#allocation69_spill] sm:$0xff] }
 0x2ae   : > { %757 = vst [vmem:[%s1746_s22 + $0x1b0] sm:$0xff] %v629_v3  ;;  %v692_v38 = vmul.f32 %v1895_v37, %v2347_v58  ;;  %v2348_v3 = vld [vmem:[#allocation72_spill] sm:$0xff] }
 0x2af   : > { %758 = vst [vmem:[%s1746_s22 + $0x1b8] sm:$0xff] %v630_v7  ;;  %v693_v55 = vmul.f32 %v1895_v37, %v2348_v3  ;;  %v2349_v7 = vld [vmem:[#allocation75_spill] sm:$0xff] }
 0x2b0   : > { %759 = vst [vmem:[%s1746_s22 + $0x1c0] sm:$0xff] %v631_v1  ;;  %v694_v0 = vmul.f32 %v1895_v37, %v2349_v7  ;;  %v2350_v1 = vld [vmem:[#allocation78_spill] sm:$0xff] }
 0x2b1   : > { %760 = vst [vmem:[%s1746_s22 + $0x1c8] sm:$0xff] %v632_v4  ;;  %v695_v2 = vmul.f32 %v1895_v37, %v2350_v1  ;;  %v2351_v4 = vld [vmem:[#allocation80_spill] sm:$0xff] }
 0x2b2   : > { %761 = vst [vmem:[%s1746_s22 + $0x1d0] sm:$0xff] %v633_v8  ;;  %v696_v6 = vmul.f32 %v1895_v37, %v2351_v4  ;;  %v2352_v8 = vld [vmem:[#allocation82_spill] sm:$0xff] }
 0x2b3   : > { %762 = vst [vmem:[%s1746_s22 + $0x1d8] sm:$0xff] %v634_v12  ;;  %v697_v10 = vmul.f32 %v1895_v37, %v2352_v8  ;;  %v2353_v12 = vld [vmem:[#allocation84_spill] sm:$0xff] }
 0x2b4   : > { %763 = vst [vmem:[%s1746_s22 + $0x1e0] sm:$0xff] %v635_v21  ;;  %v698_v17 = vmul.f32 %v1895_v37, %v2353_v12  ;;  %v2354_v21 = vld [vmem:[#allocation85_spill] sm:$0xff] }
 0x2b5   : > { %764 = vst [vmem:[%s1746_s22 + $0x1e8] sm:$0xff] %v636_v30  ;;  %v699_v25 = vmul.f32 %v1895_v37, %v2354_v21  ;;  %v2355_v30 = vld [vmem:[#allocation86_spill] sm:$0xff] }
 0x2b6   : > { %765 = vst [vmem:[%s1746_s22 + $0x1f0] sm:$0xff] %v637_v49  ;;  %v700_v43 = vmul.f32 %v1895_v37, %v2355_v30  ;;  %v1993_v49 = vpop.permute.xlu0 %567 }
 0x2b7   : > { %766 = vst [vmem:[%s1746_s22 + $0x1f8] sm:$0xff] %v638_v5  ;;  %v701_v5 = vmul.f32 %v1895_v37, %v2356_v52 }
 0x2b8   : > { %799 = vst [vmem:[%s1746_s22 + $0x300] sm:$0xff] %v671_v11  ;;  %v702_v11 = vmul.f32 %v1895_v37, %v2357_v18  ;;  %v2358_v37 = vld [vmem:[#allocation8_spill] sm:$0xff] }
 0x2b9   : > { %800 = vst [vmem:[%s1746_s22 + $0x308] sm:$0xff] %v672_v53  ;;  %v639_v53 = vmul.f32 %v998_v36, %v1993_v49  ;;  %v642_v48 = vmul.f32 %v1993_v49, %v2358_v37 }
 0x2ba   : > { %801 = vst [vmem:[%s1746_s22 + $0x310] sm:$0xff] %v673_v14  ;;  %v640_v14 = vmul.f32 %v999_v15, %v1993_v49 }
 0x2bb   : > { %802 = vst [vmem:[%s1746_s22 + $0x318] sm:$0xff] %v674_v28  ;;  %v641_v28 = vmul.f32 %v1000_v47, %v1993_v49 }
 0x2bc   : > { %803 = vst [vmem:[%s1746_s22 + $0x320] sm:$0xff] %v675_v61  ;;  %v2359_v61 = vld [vmem:[#allocation9_spill] sm:$0xff] }
 0x2bd   : > { %804 = vst [vmem:[%s1746_s22 + $0x328] sm:$0xff] %v676_v24  ;;  %v643_v41 = vmul.f32 %v1993_v49, %v2359_v61  ;;  %v2360_v24 = vld [vmem:[#allocation10_spill] sm:$0xff] }
 0x2be   : > { %805 = vst [vmem:[%s1746_s22 + $0x330] sm:$0xff] %v677_v23  ;;  %v644_v46 = vmul.f32 %v1993_v49, %v2360_v24  ;;  %v2361_v23 = vld [vmem:[#allocation11_spill] sm:$0xff] }
 0x2bf   : > { %806 = vst [vmem:[%s1746_s22 + $0x338] sm:$0xff] %v678_v44  ;;  %v645_v60 = vmul.f32 %v1993_v49, %v2361_v23  ;;  %v2362_v44 = vld [vmem:[#allocation12_spill] sm:$0xff] }
 0x2c0   : > { %807 = vst [vmem:[%s1746_s22 + $0x340] sm:$0xff] %v679_v32  ;;  %v646_v29 = vmul.f32 %v1993_v49, %v2362_v44  ;;  %v2363_v32 = vld [vmem:[#allocation13_spill] sm:$0xff] }
 0x2c1   : > { %808 = vst [vmem:[%s1746_s22 + $0x348] sm:$0xff] %v680_v39  ;;  %v647_v33 = vmul.f32 %v1993_v49, %v2363_v32  ;;  %v2364_v39 = vld [vmem:[#allocation14_spill] sm:$0xff] }
 0x2c2   : > { %809 = vst [vmem:[%s1746_s22 + $0x350] sm:$0xff] %v681_v51  ;;  %v648_v45 = vmul.f32 %v1993_v49, %v2364_v39  ;;  %v2365_v51 = vld [vmem:[#allocation17_spill] sm:$0xff] }
 0x2c3   : > { %810 = vst [vmem:[%s1746_s22 + $0x358] sm:$0xff] %v682_v9  ;;  %v649_v57 = vmul.f32 %v1993_v49, %v2365_v51  ;;  %v2366_v9 = vld [vmem:[#allocation20_spill] sm:$0xff] }
 0x2c4   : > { %811 = vst [vmem:[%s1746_s22 + $0x360] sm:$0xff] %v683_v34  ;;  %v650_v22 = vmul.f32 %v1993_v49, %v2366_v9  ;;  %v2367_v34 = vld [vmem:[#allocation22_spill] sm:$0xff] }
 0x2c5   : > { %812 = vst [vmem:[%s1746_s22 + $0x368] sm:$0xff] %v684_v26  ;;  %v651_v40 = vmul.f32 %v1993_v49, %v2367_v34  ;;  %v2368_v26 = vld [vmem:[#allocation24_spill] sm:$0xff] }
 0x2c6   : > { %813 = vst [vmem:[%s1746_s22 + $0x370] sm:$0xff] %v685_v13  ;;  %v652_v56 = vmul.f32 %v1993_v49, %v2368_v26  ;;  %v2369_v13 = vld [vmem:[#allocation26_spill] sm:$0xff] }
 0x2c7   : > { %814 = vst [vmem:[%s1746_s22 + $0x378] sm:$0xff] %v686_v31  ;;  %v653_v19 = vmul.f32 %v1993_v49, %v2369_v13  ;;  %v2370_v31 = vld [vmem:[#allocation28_spill] sm:$0xff] }
 0x2c8   : > { %815 = vst [vmem:[%s1746_s22 + $0x380] sm:$0xff] %v687_v27  ;;  %v654_v50 = vmul.f32 %v1993_v49, %v2370_v31  ;;  %v2371_v27 = vld [vmem:[#allocation31_spill] sm:$0xff] }
 0x2c9   : > { %816 = vst [vmem:[%s1746_s22 + $0x388] sm:$0xff] %v688_v20  ;;  %v655_v59 = vmul.f32 %v1993_v49, %v2371_v27  ;;  %v2372_v20 = vld [vmem:[#allocation34_spill] sm:$0xff] }
 0x2ca   : > { %817 = vst [vmem:[%s1746_s22 + $0x390] sm:$0xff] %v689_v42  ;;  %v656_v54 = vmul.f32 %v1993_v49, %v2372_v20  ;;  %v2373_v42 = vld [vmem:[#allocation37_spill] sm:$0xff] }
 0x2cb   : > { %818 = vst [vmem:[%s1746_s22 + $0x398] sm:$0xff] %v690_v35  ;;  %v657_v63 = vmul.f32 %v1993_v49, %v2373_v42  ;;  %v2374_v35 = vld [vmem:[#allocation40_spill] sm:$0xff] }
 0x2cc   : > { %819 = vst [vmem:[%s1746_s22 + $0x3a0] sm:$0xff] %v691_v62  ;;  %v658_v16 = vmul.f32 %v1993_v49, %v2374_v35  ;;  %v2375_v62 = vld [vmem:[#allocation43_spill] sm:$0xff] }
 0x2cd   : > { %820 = vst [vmem:[%s1746_s22 + $0x3a8] sm:$0xff] %v692_v38  ;;  %v659_v58 = vmul.f32 %v1993_v49, %v2375_v62  ;;  %v2376_v38 = vld [vmem:[#allocation46_spill] sm:$0xff] }
 0x2ce   : > { %821 = vst [vmem:[%s1746_s22 + $0x3b0] sm:$0xff] %v693_v55  ;;  %v660_v3 = vmul.f32 %v1993_v49, %v2376_v38  ;;  %v2377_v55 = vld [vmem:[#allocation49_spill] sm:$0xff] }
 0x2cf   : > { %822 = vst [vmem:[%s1746_s22 + $0x3b8] sm:$0xff] %v694_v0  ;;  %v661_v7 = vmul.f32 %v1993_v49, %v2377_v55  ;;  %v2378_v0 = vld [vmem:[#allocation52_spill] sm:$0xff] }
 0x2d0   : > { %823 = vst [vmem:[%s1746_s22 + $0x3c0] sm:$0xff] %v695_v2  ;;  %v662_v1 = vmul.f32 %v1993_v49, %v2378_v0  ;;  %v2379_v2 = vld [vmem:[#allocation55_spill] sm:$0xff] }
 0x2d1   : > { %824 = vst [vmem:[%s1746_s22 + $0x3c8] sm:$0xff] %v696_v6  ;;  %v663_v4 = vmul.f32 %v1993_v49, %v2379_v2  ;;  %v2380_v6 = vld [vmem:[#allocation58_spill] sm:$0xff] }
 0x2d2   : > { %825 = vst [vmem:[%s1746_s22 + $0x3d0] sm:$0xff] %v697_v10  ;;  %v664_v8 = vmul.f32 %v1993_v49, %v2380_v6  ;;  %v2381_v10 = vld [vmem:[#allocation61_spill] sm:$0xff] }
 0x2d3   : > { %826 = vst [vmem:[%s1746_s22 + $0x3d8] sm:$0xff] %v698_v17  ;;  %v665_v12 = vmul.f32 %v1993_v49, %v2381_v10  ;;  %v2382_v17 = vld [vmem:[#allocation64_spill] sm:$0xff] }
 0x2d4   : > { %827 = vst [vmem:[%s1746_s22 + $0x3e0] sm:$0xff] %v699_v25  ;;  %v666_v21 = vmul.f32 %v1993_v49, %v2382_v17  ;;  %v2383_v25 = vld [vmem:[#allocation67_spill] sm:$0xff] }
 0x2d5   : > { %828 = vst [vmem:[%s1746_s22 + $0x3e8] sm:$0xff] %v700_v43  ;;  %v667_v30 = vmul.f32 %v1993_v49, %v2383_v25  ;;  %v2384_v43 = vld [vmem:[#allocation70_spill] sm:$0xff] }
 0x2d6   : > { %829 = vst [vmem:[%s1746_s22 + $0x3f0] sm:$0xff] %v701_v5  ;;  %v668_v52 = vmul.f32 %v1993_v49, %v2384_v43  ;;  %v2385_v5 = vld [vmem:[#allocation73_spill] sm:$0xff] }
 0x2d7   : > { %830 = vst [vmem:[%s1746_s22 + $0x3f8] sm:$0xff] %v702_v11  ;;  %v669_v18 = vmul.f32 %v1993_v49, %v2385_v5  ;;  %v2386_v11 = vld [vmem:[#allocation76_spill] sm:$0xff] }
 0x2d8   : > { %767 = vst [vmem:[%s1746_s22 + $0x200] sm:$0xff] %v639_v53  ;;  %v670_v36 = vmul.f32 %v1993_v49, %v2386_v11 }
 0x2d9   : > { %768 = vst [vmem:[%s1746_s22 + $0x208] sm:$0xff] %v640_v14 }
 0x2da   : > { %769 = vst [vmem:[%s1746_s22 + $0x210] sm:$0xff] %v641_v28 }
 0x2db   : > { %770 = vst [vmem:[%s1746_s22 + $0x218] sm:$0xff] %v642_v48 }
 0x2dc   : > { %771 = vst [vmem:[%s1746_s22 + $0x220] sm:$0xff] %v643_v41 }
 0x2dd   : > { %772 = vst [vmem:[%s1746_s22 + $0x228] sm:$0xff] %v644_v46 }
 0x2de   : > { %773 = vst [vmem:[%s1746_s22 + $0x230] sm:$0xff] %v645_v60 }
 0x2df   : > { %774 = vst [vmem:[%s1746_s22 + $0x238] sm:$0xff] %v646_v29 }
 0x2e0   : > { %775 = vst [vmem:[%s1746_s22 + $0x240] sm:$0xff] %v647_v33 }
 0x2e1   : > { %776 = vst [vmem:[%s1746_s22 + $0x248] sm:$0xff] %v648_v45 }
 0x2e2   : > { %777 = vst [vmem:[%s1746_s22 + $0x250] sm:$0xff] %v649_v57 }
 0x2e3   : > { %778 = vst [vmem:[%s1746_s22 + $0x258] sm:$0xff] %v650_v22 }
 0x2e4   : > { %779 = vst [vmem:[%s1746_s22 + $0x260] sm:$0xff] %v651_v40 }
 0x2e5   : > { %780 = vst [vmem:[%s1746_s22 + $0x268] sm:$0xff] %v652_v56 }
 0x2e6   : > { %781 = vst [vmem:[%s1746_s22 + $0x270] sm:$0xff] %v653_v19 }
 0x2e7   : > { %782 = vst [vmem:[%s1746_s22 + $0x278] sm:$0xff] %v654_v50 }
 0x2e8   : > { %783 = vst [vmem:[%s1746_s22 + $0x280] sm:$0xff] %v655_v59 }
 0x2e9   : > { %784 = vst [vmem:[%s1746_s22 + $0x288] sm:$0xff] %v656_v54 }
 0x2ea   : > { %785 = vst [vmem:[%s1746_s22 + $0x290] sm:$0xff] %v657_v63 }
 0x2eb   : > { %786 = vst [vmem:[%s1746_s22 + $0x298] sm:$0xff] %v658_v16 }
 0x2ec   : > { %787 = vst [vmem:[%s1746_s22 + $0x2a0] sm:$0xff] %v659_v58 }
 0x2ed   : > { %788 = vst [vmem:[%s1746_s22 + $0x2a8] sm:$0xff] %v660_v3 }
 0x2ee   : > { %789 = vst [vmem:[%s1746_s22 + $0x2b0] sm:$0xff] %v661_v7 }
 0x2ef   : > { %790 = vst [vmem:[%s1746_s22 + $0x2b8] sm:$0xff] %v662_v1 }
 0x2f0   : > { %791 = vst [vmem:[%s1746_s22 + $0x2c0] sm:$0xff] %v663_v4 }
 0x2f1   : > { %792 = vst [vmem:[%s1746_s22 + $0x2c8] sm:$0xff] %v664_v8 }
 0x2f2   : > { %793 = vst [vmem:[%s1746_s22 + $0x2d0] sm:$0xff] %v665_v12 }
 0x2f3   : > { %794 = vst [vmem:[%s1746_s22 + $0x2d8] sm:$0xff] %v666_v21 }
 0x2f4   : > { %795 = vst [vmem:[%s1746_s22 + $0x2e0] sm:$0xff] %v667_v30 }
 0x2f5   : > { %796 = vst [vmem:[%s1746_s22 + $0x2e8] sm:$0xff] %v668_v52 }
 0x2f6   : > { %797 = vst [vmem:[%s1746_s22 + $0x2f0] sm:$0xff] %v669_v18 }
 0x2f7   : > { %798 = vst [vmem:[%s1746_s22 + $0x2f8] sm:$0xff] %v670_v36 }
 0x2f8   : > { %1058 = shalt.err (!%p1055_p4)
}
 0x2f9   : > { %s1101_s29 = smov 4096   ;;  %s1102_s17 = smov 256  }
 0x2fa   : > { %941 = dma.vmem_to_hbm [thread:$0]  (%p1173_p11), %s845_s16, 16384, %s847_s4, %s832_s6, %s1101_s29, %s1101_s29, %s1102_s17  }
 0x2fb PF: > { %s861_s19 = sand.u32 1, %s1085_s12   ;;  %p2387_p7 = scmp.ge.s32.totalorder %s1097_s15, 2 }
 0x2fc   : > { %s862_s20 = scalar_lea.sflag [#allocation4], %s861_s19 }
 0x2fd   : > { %p948_p5 = pnand %p2387_p7, %p1177_p12 }
 0x2ff   : > { %p949_p8 = pneg %p948_p5 }
 0x301   : > { %1080 = dma.done.wait (%p949_p8), %s862_s20, 16384  }
 0x302   : > { %1082 = vsyncadd (%p949_p8), %s862_s20, 4294950912  ;;  %p16_p10 = scmp.ge.s32.totalorder %s1148_s18, 4   ;;  %s2388_s12 = smov %s1089_s13 }
 0x303   : > { %s2389_s13 = smov %s1093_s14  ;;  %s2390_s14 = smov %s1160_s21 }
 0x304   : > { %s2391_s15 = smov %s1148_s18  ;;  %18 = sbr.rel (!%p16_p10) target bundleno = 5 (0x5), region = 77 }
 0x309   :  { %868 = vsyncpa [#allocation3], 1 }
 0x30a   :  { %870 = vsyncpa [#allocation3 + $0x1], 1 }
 0x30b   :  { %871 = vsyncpa [#allocation4], 1 }
 0x30c   :  { %873 = vsyncpa [#allocation4 + $0x1], 1 }

</bundles_post_ra>
